<compile_context>
chip_gen: v5e
topology: v5e:2x2
jax: 0.10.0
libtpu: 0.0.40
codegen_flags: <defaults>
</compile_context>

<pallas_src>
import math

import jax
import jax.numpy as jnp
import numpy as np
from jax.experimental import pallas as pl
from jax.experimental.pallas import tpu as pltpu


def lstm_recurrence_kernel(xw_ref, whh_ref, h_out_ref, h_ref, c_ref):
    """Runs T_blk LSTM timesteps.

    xw_ref    : (B, T_blk, 4H)  precomputed x_t @ W_ih + (b_ih + b_hh), gates [i,f,g,o]
    whh_ref   : (H, 4H)         fused hidden->gate weights
    h_out_ref : (B, T_blk, H)   hidden state emitted for every timestep
    h_ref/c_ref : (B, H) f32 VMEM scratch carrying the recurrent state
    """
    @pl.when(pl.program_id(0) == 0)
    def _():
        # hidden0=None in the PyTorch module -> zero initial (h, c)
        h_ref[...] = jnp.zeros_like(h_ref)
        c_ref[...] = jnp.zeros_like(c_ref)

    t_blk = xw_ref.shape[1]
    hdim = h_ref.shape[-1]

    w_hh = whh_ref[...]        # hoisted: reused across all unrolled steps
    xw_blk = xw_ref[...]       # (B, T_blk, 4H) — whole time block, already in VMEM
    h = h_ref[...]
    c = c_ref[...]

    # Static (unrolled) inner loop over the time block; only h @ W_hh remains
    # on the serial critical path.
    for i in range(t_blk):
        pre = xw_blk[:, i, :] + jnp.dot(h, w_hh,
                                        preferred_element_type=jnp.float32)
        i_g = jax.nn.sigmoid(pre[:, 0 * hdim:1 * hdim])
        f_g = jax.nn.sigmoid(pre[:, 1 * hdim:2 * hdim])
        g_g = jnp.tanh(pre[:, 2 * hdim:3 * hdim])
        o_g = jax.nn.sigmoid(pre[:, 3 * hdim:4 * hdim])
        c = f_g * c + i_g * g_g
        h = o_g * jnp.tanh(c)
        h_out_ref[:, i, :] = h.astype(h_out_ref.dtype)

    h_ref[...] = h
    c_ref[...] = c


def my_lstm_forward(x, params, *, t_blk=8):
    """x: (B, T, D) batch-first f32. Returns sigmoid(Linear(LSTM(x))) of shape (B, T, O)."""
    B, T, D = x.shape
    H = params["w_hh"].shape[0]

    # Largest time-block <= t_blk that divides T (keeps the grid exact).
    tb = 1
    for cand in range(min(T, t_blk), 0, -1):
        if T % cand == 0:
            tb = cand
            break

    # (1) Hoisted input projection + fused bias: one big lane-dense matmul.
    xw = x @ params["w_ih"] + params["b"]              # (B, T, 4H)

    # (2) Sequential recurrence kernel, emits all hidden states batch-first.
    hs = pl.pallas_call(
        lstm_recurrence_kernel,
        out_shape=jax.ShapeDtypeStruct((B, T, H), x.dtype),
        grid_spec=pltpu.PrefetchScalarGridSpec(
            num_scalar_prefetch=0,
            grid=(T // tb,),
            in_specs=[
                pl.BlockSpec((B, tb, 4 * H), lambda t: (0, t, 0)),  # xw time block
                pl.BlockSpec((H, 4 * H), lambda t: (0, 0)),         # W_hh (constant)
            ],
            out_specs=pl.BlockSpec((B, tb, H), lambda t: (0, t, 0)),
            scratch_shapes=[
                pltpu.VMEM((B, H), jnp.float32),   # h state (persists across grid)
                pltpu.VMEM((B, H), jnp.float32),   # c state
            ],
        ),
        compiler_params=pltpu.CompilerParams(
            dimension_semantics=("arbitrary",),    # recurrent over time
        ),
    )(xw, params["w_hh"])

    # (3) Hoisted output projection + sigmoid: one batched matmul, lane-dense output.
    return jax.nn.sigmoid(hs @ params["w_lin"] + params["b_lin"])


def init_params(key, input_dim, hidden_dim, output_dim):
    """Deterministic init mimicking PyTorch shapes; gate order [i, f, g, o] along 4H."""
    k = jax.random.split(key, 6)
    bound = 1.0 / math.sqrt(hidden_dim)
    # PyTorch weight_ih_l0: (4H, D); stored fused & transposed as (D, 4H).
    w_ih = jax.random.uniform(k[0], (input_dim, 4 * hidden_dim),
                              jnp.float32, -bound, bound)
    w_hh = jax.random.uniform(k[1], (hidden_dim, 4 * hidden_dim),
                              jnp.float32, -bound, bound)
    b_ih = jax.random.uniform(k[2], (4 * hidden_dim,), jnp.float32, -bound, bound)
    b_hh = jax.random.uniform(k[3], (4 * hidden_dim,), jnp.float32, -bound, bound)
    w_lin = jax.random.uniform(k[4], (hidden_dim, output_dim),
                               jnp.float32, -bound, bound)
    b_lin = jax.random.uniform(k[5], (output_dim,), jnp.float32, -bound, bound)
    return {"w_ih": w_ih, "w_hh": w_hh, "b": b_ih + b_hh,
            "w_lin": w_lin, "b_lin": b_lin}


def reference_forward(x, p):
    """Pure-JAX reference matching nn.LSTM(batch_first) + Linear + sigmoid."""
    B, T, D = x.shape
    H = p["w_hh"].shape[0]
    h0 = jnp.zeros((B, H), jnp.float32)
    c0 = jnp.zeros((B, H), jnp.float32)

    def step(carry, x_t):
        h, c = carry
        pre = x_t @ p["w_ih"] + h @ p["w_hh"] + p["b"]
        i = jax.nn.sigmoid(pre[:, 0:H])
        f = jax.nn.sigmoid(pre[:, H:2 * H])
        g = jnp.tanh(pre[:, 2 * H:3 * H])
        o = jax.nn.sigmoid(pre[:, 3 * H:4 * H])
        c = f * c + i * g
        h = o * jnp.tanh(c)
        return (h, c), h

    _, hs = jax.lax.scan(step, (h0, c0), jnp.transpose(x, (1, 0, 2)))
    hs = jnp.transpose(hs, (1, 0, 2))                       # (B, T, H)
    return jax.nn.sigmoid(hs @ p["w_lin"] + p["b_lin"])


if __name__ == "__main__":
    B, T, D, H, O = 2, 8, 16, 32, 8   # 4H = 128 -> fused gate dim fills the lanes
    key = jax.random.PRNGKey(0)
    k_x, k_p = jax.random.split(key)
    x = jax.random.normal(k_x, (B, T, D), jnp.float32)
    params = init_params(k_p, D, H, O)

    out = jax.block_until_ready(my_lstm_forward(x, params))
    ref = jax.block_until_ready(reference_forward(x, params))

    assert out.shape == (B, T, O)
    np.testing.assert_allclose(np.asarray(out), np.asarray(ref),
                               rtol=1e-4, atol=1e-5)
    print("KERNEL_OK")
</pallas_src>

<mosaic_0001>
module attributes {stable_mosaic.version = 11 : i64} {
  func.func @lstm_recurrence_kernel(%arg0: i32, %arg1: memref<2x8x128xf32, #tpu.memory_space<vmem>>, %arg2: memref<32x128xf32, #tpu.memory_space<vmem>>, %arg3: memref<2x8x32xf32, #tpu.memory_space<vmem>>, %arg4: memref<2x32xf32, #tpu.memory_space<vmem>>, %arg5: memref<2x32xf32, #tpu.memory_space<vmem>>) attributes {dimension_semantics = [#tpu.dimension_semantics<arbitrary>], iteration_bounds = array<i64: 1>, scalar_prefetch = 0 : i64, scratch_operands = 2 : i64, tpu.core_type = #tpu.core_type<tc>, window_params = [{transform_indices = @transform_0, window_bounds = array<i64: 2, 8, 128>}, {pipeline_mode = #tpu.pipeline_mode<synchronous>, transform_indices = @transform_1, window_bounds = array<i64: 32, 128>}, {transform_indices = @transform_2, window_bounds = array<i64: 2, 8, 32>}]} {
    %c0_i32 = arith.constant 0 : i32
    %0 = arith.cmpi eq, %arg0, %c0_i32 : i32
    %1 = arith.extui %0 : i1 to i32
    %c0_i32_0 = arith.constant 0 : i32
    %2 = arith.cmpi ne, %1, %c0_i32_0 : i32
    scf.if %2 {
      %cst_61 = arith.constant 0.000000e+00 : f32
      %265 = vector.broadcast %cst_61 : f32 to vector<2x32xf32>
      %c0_62 = arith.constant 0 : index
      %c0_63 = arith.constant 0 : index
      %266 = vector.load %arg4[%c0_62, %c0_63] : memref<2x32xf32, #tpu.memory_space<vmem>>, vector<2x32xf32>
      tpu.vector_store %arg4[%c0_62, %c0_63], %265 {strides = array<i32>} : memref<2x32xf32, #tpu.memory_space<vmem>>, vector<2x32xf32>,
      %cst_64 = arith.constant 0.000000e+00 : f32
      %267 = vector.broadcast %cst_64 : f32 to vector<2x32xf32>
      %c0_65 = arith.constant 0 : index
      %c0_66 = arith.constant 0 : index
      %268 = vector.load %arg5[%c0_65, %c0_66] : memref<2x32xf32, #tpu.memory_space<vmem>>, vector<2x32xf32>
      tpu.vector_store %arg5[%c0_65, %c0_66], %267 {strides = array<i32>} : memref<2x32xf32, #tpu.memory_space<vmem>>, vector<2x32xf32>,
    } else {
    }
    %c0 = arith.constant 0 : index
    %c0_1 = arith.constant 0 : index
    %3 = vector.load %arg2[%c0, %c0_1] : memref<32x128xf32, #tpu.memory_space<vmem>>, vector<32x128xf32>
    %c0_2 = arith.constant 0 : index
    %c0_3 = arith.constant 0 : index
    %c0_4 = arith.constant 0 : index
    %4 = vector.load %arg1[%c0_2, %c0_3, %c0_4] : memref<2x8x128xf32, #tpu.memory_space<vmem>>, vector<2x8x128xf32>
    %c0_5 = arith.constant 0 : index
    %c0_6 = arith.constant 0 : index
    %5 = vector.load %arg4[%c0_5, %c0_6] : memref<2x32xf32, #tpu.memory_space<vmem>>, vector<2x32xf32>
    %c0_7 = arith.constant 0 : index
    %c0_8 = arith.constant 0 : index
    %6 = vector.load %arg5[%c0_7, %c0_8] : memref<2x32xf32, #tpu.memory_space<vmem>>, vector<2x32xf32>
    %7 = vector.extract_strided_slice %4 {offsets = [0, 0, 0], sizes = [2, 1, 128], strides = [1, 1, 1]} : vector<2x8x128xf32> to vector<2x1x128xf32>
    %8 = vector.shape_cast %7 : vector<2x1x128xf32> to vector<2x128xf32>
    %cst = arith.constant dense<0.000000e+00> : vector<2x128xf32>
    %9 = tpu.matmul %5, %3, %cst {dimension_numbers = #tpu.dot_dimension_numbers<[1], [0], [0], [1], [0, 0, 1, 1], [], []>} : vector<2x32xf32>, vector<32x128xf32>, vector<2x128xf32> -> vector<2x128xf32>
    %10 = arith.addf %8, %9 : vector<2x128xf32>
    %11 = vector.extract_strided_slice %10 {offsets = [0, 0], sizes = [2, 32], strides = [1, 1]} : vector<2x128xf32> to vector<2x32xf32>
    %12 = arith.negf %11 : vector<2x32xf32>
    %13 = math.exp %12 : vector<2x32xf32>
    %cst_9 = arith.constant 1.000000e+00 : f32
    %14 = vector.broadcast %cst_9 : f32 to vector<2x32xf32>
    %15 = arith.addf %14, %13 : vector<2x32xf32>
    %16 = arith.divf %14, %15 : vector<2x32xf32>
    %17 = vector.extract_strided_slice %10 {offsets = [0, 32], sizes = [2, 32], strides = [1, 1]} : vector<2x128xf32> to vector<2x32xf32>
    %18 = arith.negf %17 : vector<2x32xf32>
    %19 = math.exp %18 : vector<2x32xf32>
    %cst_10 = arith.constant 1.000000e+00 : f32
    %20 = vector.broadcast %cst_10 : f32 to vector<2x32xf32>
    %21 = arith.addf %20, %19 : vector<2x32xf32>
    %22 = arith.divf %20, %21 : vector<2x32xf32>
    %23 = vector.extract_strided_slice %10 {offsets = [0, 64], sizes = [2, 32], strides = [1, 1]} : vector<2x128xf32> to vector<2x32xf32>
    %24 = math.tanh %23 : vector<2x32xf32>
    %25 = vector.extract_strided_slice %10 {offsets = [0, 96], sizes = [2, 32], strides = [1, 1]} : vector<2x128xf32> to vector<2x32xf32>
    %26 = arith.negf %25 : vector<2x32xf32>
    %27 = math.exp %26 : vector<2x32xf32>
    %cst_11 = arith.constant 1.000000e+00 : f32
    %28 = vector.broadcast %cst_11 : f32 to vector<2x32xf32>
    %29 = arith.addf %28, %27 : vector<2x32xf32>
    %30 = arith.divf %28, %29 : vector<2x32xf32>
    %31 = arith.mulf %22, %6 : vector<2x32xf32>
    %32 = arith.mulf %16, %24 : vector<2x32xf32>
    %33 = arith.addf %31, %32 : vector<2x32xf32>
    %34 = math.tanh %33 : vector<2x32xf32>
    %35 = arith.mulf %30, %34 : vector<2x32xf32>
    %c0_12 = arith.constant 0 : index
    %c0_13 = arith.constant 0 : index
    %c0_14 = arith.constant 0 : index
    %36 = vector.load %arg3[%c0_12, %c0_13, %c0_14] : memref<2x8x32xf32, #tpu.memory_space<vmem>>, vector<2x1x32xf32>
    %37 = vector.shape_cast %36 : vector<2x1x32xf32> to vector<2x32xf32>
    %38 = vector.shape_cast %35 : vector<2x32xf32> to vector<2x1x32xf32>
    tpu.vector_store %arg3[%c0_12, %c0_13, %c0_14], %38 {strides = array<i32>} : memref<2x8x32xf32, #tpu.memory_space<vmem>>, vector<2x1x32xf32>,
    %39 = vector.extract_strided_slice %4 {offsets = [0, 1, 0], sizes = [2, 1, 128], strides = [1, 1, 1]} : vector<2x8x128xf32> to vector<2x1x128xf32>
    %40 = vector.shape_cast %39 : vector<2x1x128xf32> to vector<2x128xf32>
    %cst_15 = arith.constant dense<0.000000e+00> : vector<2x128xf32>
    %41 = tpu.matmul %35, %3, %cst_15 {dimension_numbers = #tpu.dot_dimension_numbers<[1], [0], [0], [1], [0, 0, 1, 1], [], []>} : vector<2x32xf32>, vector<32x128xf32>, vector<2x128xf32> -> vector<2x128xf32>
    %42 = arith.addf %40, %41 : vector<2x128xf32>
    %43 = vector.extract_strided_slice %42 {offsets = [0, 0], sizes = [2, 32], strides = [1, 1]} : vector<2x128xf32> to vector<2x32xf32>
    %44 = arith.negf %43 : vector<2x32xf32>
    %45 = math.exp %44 : vector<2x32xf32>
    %cst_16 = arith.constant 1.000000e+00 : f32
    %46 = vector.broadcast %cst_16 : f32 to vector<2x32xf32>
    %47 = arith.addf %46, %45 : vector<2x32xf32>
    %48 = arith.divf %46, %47 : vector<2x32xf32>
    %49 = vector.extract_strided_slice %42 {offsets = [0, 32], sizes = [2, 32], strides = [1, 1]} : vector<2x128xf32> to vector<2x32xf32>
    %50 = arith.negf %49 : vector<2x32xf32>
    %51 = math.exp %50 : vector<2x32xf32>
    %cst_17 = arith.constant 1.000000e+00 : f32
    %52 = vector.broadcast %cst_17 : f32 to vector<2x32xf32>
    %53 = arith.addf %52, %51 : vector<2x32xf32>
    %54 = arith.divf %52, %53 : vector<2x32xf32>
    %55 = vector.extract_strided_slice %42 {offsets = [0, 64], sizes = [2, 32], strides = [1, 1]} : vector<2x128xf32> to vector<2x32xf32>
    %56 = math.tanh %55 : vector<2x32xf32>
    %57 = vector.extract_strided_slice %42 {offsets = [0, 96], sizes = [2, 32], strides = [1, 1]} : vector<2x128xf32> to vector<2x32xf32>
    %58 = arith.negf %57 : vector<2x32xf32>
    %59 = math.exp %58 : vector<2x32xf32>
    %cst_18 = arith.constant 1.000000e+00 : f32
    %60 = vector.broadcast %cst_18 : f32 to vector<2x32xf32>
    %61 = arith.addf %60, %59 : vector<2x32xf32>
    %62 = arith.divf %60, %61 : vector<2x32xf32>
    %63 = arith.mulf %54, %33 : vector<2x32xf32>
    %64 = arith.mulf %48, %56 : vector<2x32xf32>
    %65 = arith.addf %63, %64 : vector<2x32xf32>
    %66 = math.tanh %65 : vector<2x32xf32>
    %67 = arith.mulf %62, %66 : vector<2x32xf32>
    %c0_19 = arith.constant 0 : index
    %c1 = arith.constant 1 : index
    %c0_20 = arith.constant 0 : index
    %68 = vector.load %arg3[%c0_19, %c1, %c0_20] : memref<2x8x32xf32, #tpu.memory_space<vmem>>, vector<2x1x32xf32>
    %69 = vector.shape_cast %68 : vector<2x1x32xf32> to vector<2x32xf32>
    %70 = vector.shape_cast %67 : vector<2x32xf32> to vector<2x1x32xf32>
    tpu.vector_store %arg3[%c0_19, %c1, %c0_20], %70 {strides = array<i32>} : memref<2x8x32xf32, #tpu.memory_space<vmem>>, vector<2x1x32xf32>,
    %71 = vector.extract_strided_slice %4 {offsets = [0, 2, 0], sizes = [2, 1, 128], strides = [1, 1, 1]} : vector<2x8x128xf32> to vector<2x1x128xf32>
    %72 = vector.shape_cast %71 : vector<2x1x128xf32> to vector<2x128xf32>
    %cst_21 = arith.constant dense<0.000000e+00> : vector<2x128xf32>
    %73 = tpu.matmul %67, %3, %cst_21 {dimension_numbers = #tpu.dot_dimension_numbers<[1], [0], [0], [1], [0, 0, 1, 1], [], []>} : vector<2x32xf32>, vector<32x128xf32>, vector<2x128xf32> -> vector<2x128xf32>
    %74 = arith.addf %72, %73 : vector<2x128xf32>
    %75 = vector.extract_strided_slice %74 {offsets = [0, 0], sizes = [2, 32], strides = [1, 1]} : vector<2x128xf32> to vector<2x32xf32>
    %76 = arith.negf %75 : vector<2x32xf32>
    %77 = math.exp %76 : vector<2x32xf32>
    %cst_22 = arith.constant 1.000000e+00 : f32
    %78 = vector.broadcast %cst_22 : f32 to vector<2x32xf32>
    %79 = arith.addf %78, %77 : vector<2x32xf32>
    %80 = arith.divf %78, %79 : vector<2x32xf32>
    %81 = vector.extract_strided_slice %74 {offsets = [0, 32], sizes = [2, 32], strides = [1, 1]} : vector<2x128xf32> to vector<2x32xf32>
    %82 = arith.negf %81 : vector<2x32xf32>
    %83 = math.exp %82 : vector<2x32xf32>
    %cst_23 = arith.constant 1.000000e+00 : f32
    %84 = vector.broadcast %cst_23 : f32 to vector<2x32xf32>
    %85 = arith.addf %84, %83 : vector<2x32xf32>
    %86 = arith.divf %84, %85 : vector<2x32xf32>
    %87 = vector.extract_strided_slice %74 {offsets = [0, 64], sizes = [2, 32], strides = [1, 1]} : vector<2x128xf32> to vector<2x32xf32>
    %88 = math.tanh %87 : vector<2x32xf32>
    %89 = vector.extract_strided_slice %74 {offsets = [0, 96], sizes = [2, 32], strides = [1, 1]} : vector<2x128xf32> to vector<2x32xf32>
    %90 = arith.negf %89 : vector<2x32xf32>
    %91 = math.exp %90 : vector<2x32xf32>
    %cst_24 = arith.constant 1.000000e+00 : f32
    %92 = vector.broadcast %cst_24 : f32 to vector<2x32xf32>
    %93 = arith.addf %92, %91 : vector<2x32xf32>
    %94 = arith.divf %92, %93 : vector<2x32xf32>
    %95 = arith.mulf %86, %65 : vector<2x32xf32>
    %96 = arith.mulf %80, %88 : vector<2x32xf32>
    %97 = arith.addf %95, %96 : vector<2x32xf32>
    %98 = math.tanh %97 : vector<2x32xf32>
    %99 = arith.mulf %94, %98 : vector<2x32xf32>
    %c0_25 = arith.constant 0 : index
    %c2 = arith.constant 2 : index
    %c0_26 = arith.constant 0 : index
    %100 = vector.load %arg3[%c0_25, %c2, %c0_26] : memref<2x8x32xf32, #tpu.memory_space<vmem>>, vector<2x1x32xf32>
    %101 = vector.shape_cast %100 : vector<2x1x32xf32> to vector<2x32xf32>
    %102 = vector.shape_cast %99 : vector<2x32xf32> to vector<2x1x32xf32>
    tpu.vector_store %arg3[%c0_25, %c2, %c0_26], %102 {strides = array<i32>} : memref<2x8x32xf32, #tpu.memory_space<vmem>>, vector<2x1x32xf32>,
    %103 = vector.extract_strided_slice %4 {offsets = [0, 3, 0], sizes = [2, 1, 128], strides = [1, 1, 1]} : vector<2x8x128xf32> to vector<2x1x128xf32>
    %104 = vector.shape_cast %103 : vector<2x1x128xf32> to vector<2x128xf32>
    %cst_27 = arith.constant dense<0.000000e+00> : vector<2x128xf32>
    %105 = tpu.matmul %99, %3, %cst_27 {dimension_numbers = #tpu.dot_dimension_numbers<[1], [0], [0], [1], [0, 0, 1, 1], [], []>} : vector<2x32xf32>, vector<32x128xf32>, vector<2x128xf32> -> vector<2x128xf32>
    %106 = arith.addf %104, %105 : vector<2x128xf32>
    %107 = vector.extract_strided_slice %106 {offsets = [0, 0], sizes = [2, 32], strides = [1, 1]} : vector<2x128xf32> to vector<2x32xf32>
    %108 = arith.negf %107 : vector<2x32xf32>
    %109 = math.exp %108 : vector<2x32xf32>
    %cst_28 = arith.constant 1.000000e+00 : f32
    %110 = vector.broadcast %cst_28 : f32 to vector<2x32xf32>
    %111 = arith.addf %110, %109 : vector<2x32xf32>
    %112 = arith.divf %110, %111 : vector<2x32xf32>
    %113 = vector.extract_strided_slice %106 {offsets = [0, 32], sizes = [2, 32], strides = [1, 1]} : vector<2x128xf32> to vector<2x32xf32>
    %114 = arith.negf %113 : vector<2x32xf32>
    %115 = math.exp %114 : vector<2x32xf32>
    %cst_29 = arith.constant 1.000000e+00 : f32
    %116 = vector.broadcast %cst_29 : f32 to vector<2x32xf32>
    %117 = arith.addf %116, %115 : vector<2x32xf32>
    %118 = arith.divf %116, %117 : vector<2x32xf32>
    %119 = vector.extract_strided_slice %106 {offsets = [0, 64], sizes = [2, 32], strides = [1, 1]} : vector<2x128xf32> to vector<2x32xf32>
    %120 = math.tanh %119 : vector<2x32xf32>
    %121 = vector.extract_strided_slice %106 {offsets = [0, 96], sizes = [2, 32], strides = [1, 1]} : vector<2x128xf32> to vector<2x32xf32>
    %122 = arith.negf %121 : vector<2x32xf32>
    %123 = math.exp %122 : vector<2x32xf32>
    %cst_30 = arith.constant 1.000000e+00 : f32
    %124 = vector.broadcast %cst_30 : f32 to vector<2x32xf32>
    %125 = arith.addf %124, %123 : vector<2x32xf32>
    %126 = arith.divf %124, %125 : vector<2x32xf32>
    %127 = arith.mulf %118, %97 : vector<2x32xf32>
    %128 = arith.mulf %112, %120 : vector<2x32xf32>
    %129 = arith.addf %127, %128 : vector<2x32xf32>
    %130 = math.tanh %129 : vector<2x32xf32>
    %131 = arith.mulf %126, %130 : vector<2x32xf32>
    %c0_31 = arith.constant 0 : index
    %c3 = arith.constant 3 : index
    %c0_32 = arith.constant 0 : index
    %132 = vector.load %arg3[%c0_31, %c3, %c0_32] : memref<2x8x32xf32, #tpu.memory_space<vmem>>, vector<2x1x32xf32>
    %133 = vector.shape_cast %132 : vector<2x1x32xf32> to vector<2x32xf32>
    %134 = vector.shape_cast %131 : vector<2x32xf32> to vector<2x1x32xf32>
    tpu.vector_store %arg3[%c0_31, %c3, %c0_32], %134 {strides = array<i32>} : memref<2x8x32xf32, #tpu.memory_space<vmem>>, vector<2x1x32xf32>,
    %135 = vector.extract_strided_slice %4 {offsets = [0, 4, 0], sizes = [2, 1, 128], strides = [1, 1, 1]} : vector<2x8x128xf32> to vector<2x1x128xf32>
    %136 = vector.shape_cast %135 : vector<2x1x128xf32> to vector<2x128xf32>
    %cst_33 = arith.constant dense<0.000000e+00> : vector<2x128xf32>
    %137 = tpu.matmul %131, %3, %cst_33 {dimension_numbers = #tpu.dot_dimension_numbers<[1], [0], [0], [1], [0, 0, 1, 1], [], []>} : vector<2x32xf32>, vector<32x128xf32>, vector<2x128xf32> -> vector<2x128xf32>
    %138 = arith.addf %136, %137 : vector<2x128xf32>
    %139 = vector.extract_strided_slice %138 {offsets = [0, 0], sizes = [2, 32], strides = [1, 1]} : vector<2x128xf32> to vector<2x32xf32>
    %140 = arith.negf %139 : vector<2x32xf32>
    %141 = math.exp %140 : vector<2x32xf32>
    %cst_34 = arith.constant 1.000000e+00 : f32
    %142 = vector.broadcast %cst_34 : f32 to vector<2x32xf32>
    %143 = arith.addf %142, %141 : vector<2x32xf32>
    %144 = arith.divf %142, %143 : vector<2x32xf32>
    %145 = vector.extract_strided_slice %138 {offsets = [0, 32], sizes = [2, 32], strides = [1, 1]} : vector<2x128xf32> to vector<2x32xf32>
    %146 = arith.negf %145 : vector<2x32xf32>
    %147 = math.exp %146 : vector<2x32xf32>
    %cst_35 = arith.constant 1.000000e+00 : f32
    %148 = vector.broadcast %cst_35 : f32 to vector<2x32xf32>
    %149 = arith.addf %148, %147 : vector<2x32xf32>
    %150 = arith.divf %148, %149 : vector<2x32xf32>
    %151 = vector.extract_strided_slice %138 {offsets = [0, 64], sizes = [2, 32], strides = [1, 1]} : vector<2x128xf32> to vector<2x32xf32>
    %152 = math.tanh %151 : vector<2x32xf32>
    %153 = vector.extract_strided_slice %138 {offsets = [0, 96], sizes = [2, 32], strides = [1, 1]} : vector<2x128xf32> to vector<2x32xf32>
    %154 = arith.negf %153 : vector<2x32xf32>
    %155 = math.exp %154 : vector<2x32xf32>
    %cst_36 = arith.constant 1.000000e+00 : f32
    %156 = vector.broadcast %cst_36 : f32 to vector<2x32xf32>
    %157 = arith.addf %156, %155 : vector<2x32xf32>
    %158 = arith.divf %156, %157 : vector<2x32xf32>
    %159 = arith.mulf %150, %129 : vector<2x32xf32>
    %160 = arith.mulf %144, %152 : vector<2x32xf32>
    %161 = arith.addf %159, %160 : vector<2x32xf32>
    %162 = math.tanh %161 : vector<2x32xf32>
    %163 = arith.mulf %158, %162 : vector<2x32xf32>
    %c0_37 = arith.constant 0 : index
    %c4 = arith.constant 4 : index
    %c0_38 = arith.constant 0 : index
    %164 = vector.load %arg3[%c0_37, %c4, %c0_38] : memref<2x8x32xf32, #tpu.memory_space<vmem>>, vector<2x1x32xf32>
    %165 = vector.shape_cast %164 : vector<2x1x32xf32> to vector<2x32xf32>
    %166 = vector.shape_cast %163 : vector<2x32xf32> to vector<2x1x32xf32>
    tpu.vector_store %arg3[%c0_37, %c4, %c0_38], %166 {strides = array<i32>} : memref<2x8x32xf32, #tpu.memory_space<vmem>>, vector<2x1x32xf32>,
    %167 = vector.extract_strided_slice %4 {offsets = [0, 5, 0], sizes = [2, 1, 128], strides = [1, 1, 1]} : vector<2x8x128xf32> to vector<2x1x128xf32>
    %168 = vector.shape_cast %167 : vector<2x1x128xf32> to vector<2x128xf32>
    %cst_39 = arith.constant dense<0.000000e+00> : vector<2x128xf32>
    %169 = tpu.matmul %163, %3, %cst_39 {dimension_numbers = #tpu.dot_dimension_numbers<[1], [0], [0], [1], [0, 0, 1, 1], [], []>} : vector<2x32xf32>, vector<32x128xf32>, vector<2x128xf32> -> vector<2x128xf32>
    %170 = arith.addf %168, %169 : vector<2x128xf32>
    %171 = vector.extract_strided_slice %170 {offsets = [0, 0], sizes = [2, 32], strides = [1, 1]} : vector<2x128xf32> to vector<2x32xf32>
    %172 = arith.negf %171 : vector<2x32xf32>
    %173 = math.exp %172 : vector<2x32xf32>
    %cst_40 = arith.constant 1.000000e+00 : f32
    %174 = vector.broadcast %cst_40 : f32 to vector<2x32xf32>
    %175 = arith.addf %174, %173 : vector<2x32xf32>
    %176 = arith.divf %174, %175 : vector<2x32xf32>
    %177 = vector.extract_strided_slice %170 {offsets = [0, 32], sizes = [2, 32], strides = [1, 1]} : vector<2x128xf32> to vector<2x32xf32>
    %178 = arith.negf %177 : vector<2x32xf32>
    %179 = math.exp %178 : vector<2x32xf32>
    %cst_41 = arith.constant 1.000000e+00 : f32
    %180 = vector.broadcast %cst_41 : f32 to vector<2x32xf32>
    %181 = arith.addf %180, %179 : vector<2x32xf32>
    %182 = arith.divf %180, %181 : vector<2x32xf32>
    %183 = vector.extract_strided_slice %170 {offsets = [0, 64], sizes = [2, 32], strides = [1, 1]} : vector<2x128xf32> to vector<2x32xf32>
    %184 = math.tanh %183 : vector<2x32xf32>
    %185 = vector.extract_strided_slice %170 {offsets = [0, 96], sizes = [2, 32], strides = [1, 1]} : vector<2x128xf32> to vector<2x32xf32>
    %186 = arith.negf %185 : vector<2x32xf32>
    %187 = math.exp %186 : vector<2x32xf32>
    %cst_42 = arith.constant 1.000000e+00 : f32
    %188 = vector.broadcast %cst_42 : f32 to vector<2x32xf32>
    %189 = arith.addf %188, %187 : vector<2x32xf32>
    %190 = arith.divf %188, %189 : vector<2x32xf32>
    %191 = arith.mulf %182, %161 : vector<2x32xf32>
    %192 = arith.mulf %176, %184 : vector<2x32xf32>
    %193 = arith.addf %191, %192 : vector<2x32xf32>
    %194 = math.tanh %193 : vector<2x32xf32>
    %195 = arith.mulf %190, %194 : vector<2x32xf32>
    %c0_43 = arith.constant 0 : index
    %c5 = arith.constant 5 : index
    %c0_44 = arith.constant 0 : index
    %196 = vector.load %arg3[%c0_43, %c5, %c0_44] : memref<2x8x32xf32, #tpu.memory_space<vmem>>, vector<2x1x32xf32>
    %197 = vector.shape_cast %196 : vector<2x1x32xf32> to vector<2x32xf32>
    %198 = vector.shape_cast %195 : vector<2x32xf32> to vector<2x1x32xf32>
    tpu.vector_store %arg3[%c0_43, %c5, %c0_44], %198 {strides = array<i32>} : memref<2x8x32xf32, #tpu.memory_space<vmem>>, vector<2x1x32xf32>,
    %199 = vector.extract_strided_slice %4 {offsets = [0, 6, 0], sizes = [2, 1, 128], strides = [1, 1, 1]} : vector<2x8x128xf32> to vector<2x1x128xf32>
    %200 = vector.shape_cast %199 : vector<2x1x128xf32> to vector<2x128xf32>
    %cst_45 = arith.constant dense<0.000000e+00> : vector<2x128xf32>
    %201 = tpu.matmul %195, %3, %cst_45 {dimension_numbers = #tpu.dot_dimension_numbers<[1], [0], [0], [1], [0, 0, 1, 1], [], []>} : vector<2x32xf32>, vector<32x128xf32>, vector<2x128xf32> -> vector<2x128xf32>
    %202 = arith.addf %200, %201 : vector<2x128xf32>
    %203 = vector.extract_strided_slice %202 {offsets = [0, 0], sizes = [2, 32], strides = [1, 1]} : vector<2x128xf32> to vector<2x32xf32>
    %204 = arith.negf %203 : vector<2x32xf32>
    %205 = math.exp %204 : vector<2x32xf32>
    %cst_46 = arith.constant 1.000000e+00 : f32
    %206 = vector.broadcast %cst_46 : f32 to vector<2x32xf32>
    %207 = arith.addf %206, %205 : vector<2x32xf32>
    %208 = arith.divf %206, %207 : vector<2x32xf32>
    %209 = vector.extract_strided_slice %202 {offsets = [0, 32], sizes = [2, 32], strides = [1, 1]} : vector<2x128xf32> to vector<2x32xf32>
    %210 = arith.negf %209 : vector<2x32xf32>
    %211 = math.exp %210 : vector<2x32xf32>
    %cst_47 = arith.constant 1.000000e+00 : f32
    %212 = vector.broadcast %cst_47 : f32 to vector<2x32xf32>
    %213 = arith.addf %212, %211 : vector<2x32xf32>
    %214 = arith.divf %212, %213 : vector<2x32xf32>
    %215 = vector.extract_strided_slice %202 {offsets = [0, 64], sizes = [2, 32], strides = [1, 1]} : vector<2x128xf32> to vector<2x32xf32>
    %216 = math.tanh %215 : vector<2x32xf32>
    %217 = vector.extract_strided_slice %202 {offsets = [0, 96], sizes = [2, 32], strides = [1, 1]} : vector<2x128xf32> to vector<2x32xf32>
    %218 = arith.negf %217 : vector<2x32xf32>
    %219 = math.exp %218 : vector<2x32xf32>
    %cst_48 = arith.constant 1.000000e+00 : f32
    %220 = vector.broadcast %cst_48 : f32 to vector<2x32xf32>
    %221 = arith.addf %220, %219 : vector<2x32xf32>
    %222 = arith.divf %220, %221 : vector<2x32xf32>
    %223 = arith.mulf %214, %193 : vector<2x32xf32>
    %224 = arith.mulf %208, %216 : vector<2x32xf32>
    %225 = arith.addf %223, %224 : vector<2x32xf32>
    %226 = math.tanh %225 : vector<2x32xf32>
    %227 = arith.mulf %222, %226 : vector<2x32xf32>
    %c0_49 = arith.constant 0 : index
    %c6 = arith.constant 6 : index
    %c0_50 = arith.constant 0 : index
    %228 = vector.load %arg3[%c0_49, %c6, %c0_50] : memref<2x8x32xf32, #tpu.memory_space<vmem>>, vector<2x1x32xf32>
    %229 = vector.shape_cast %228 : vector<2x1x32xf32> to vector<2x32xf32>
    %230 = vector.shape_cast %227 : vector<2x32xf32> to vector<2x1x32xf32>
    tpu.vector_store %arg3[%c0_49, %c6, %c0_50], %230 {strides = array<i32>} : memref<2x8x32xf32, #tpu.memory_space<vmem>>, vector<2x1x32xf32>,
    %231 = vector.extract_strided_slice %4 {offsets = [0, 7, 0], sizes = [2, 1, 128], strides = [1, 1, 1]} : vector<2x8x128xf32> to vector<2x1x128xf32>
    %232 = vector.shape_cast %231 : vector<2x1x128xf32> to vector<2x128xf32>
    %cst_51 = arith.constant dense<0.000000e+00> : vector<2x128xf32>
    %233 = tpu.matmul %227, %3, %cst_51 {dimension_numbers = #tpu.dot_dimension_numbers<[1], [0], [0], [1], [0, 0, 1, 1], [], []>} : vector<2x32xf32>, vector<32x128xf32>, vector<2x128xf32> -> vector<2x128xf32>
    %234 = arith.addf %232, %233 : vector<2x128xf32>
    %235 = vector.extract_strided_slice %234 {offsets = [0, 0], sizes = [2, 32], strides = [1, 1]} : vector<2x128xf32> to vector<2x32xf32>
    %236 = arith.negf %235 : vector<2x32xf32>
    %237 = math.exp %236 : vector<2x32xf32>
    %cst_52 = arith.constant 1.000000e+00 : f32
    %238 = vector.broadcast %cst_52 : f32 to vector<2x32xf32>
    %239 = arith.addf %238, %237 : vector<2x32xf32>
    %240 = arith.divf %238, %239 : vector<2x32xf32>
    %241 = vector.extract_strided_slice %234 {offsets = [0, 32], sizes = [2, 32], strides = [1, 1]} : vector<2x128xf32> to vector<2x32xf32>
    %242 = arith.negf %241 : vector<2x32xf32>
    %243 = math.exp %242 : vector<2x32xf32>
    %cst_53 = arith.constant 1.000000e+00 : f32
    %244 = vector.broadcast %cst_53 : f32 to vector<2x32xf32>
    %245 = arith.addf %244, %243 : vector<2x32xf32>
    %246 = arith.divf %244, %245 : vector<2x32xf32>
    %247 = vector.extract_strided_slice %234 {offsets = [0, 64], sizes = [2, 32], strides = [1, 1]} : vector<2x128xf32> to vector<2x32xf32>
    %248 = math.tanh %247 : vector<2x32xf32>
    %249 = vector.extract_strided_slice %234 {offsets = [0, 96], sizes = [2, 32], strides = [1, 1]} : vector<2x128xf32> to vector<2x32xf32>
    %250 = arith.negf %249 : vector<2x32xf32>
    %251 = math.exp %250 : vector<2x32xf32>
    %cst_54 = arith.constant 1.000000e+00 : f32
    %252 = vector.broadcast %cst_54 : f32 to vector<2x32xf32>
    %253 = arith.addf %252, %251 : vector<2x32xf32>
    %254 = arith.divf %252, %253 : vector<2x32xf32>
    %255 = arith.mulf %246, %225 : vector<2x32xf32>
    %256 = arith.mulf %240, %248 : vector<2x32xf32>
    %257 = arith.addf %255, %256 : vector<2x32xf32>
    %258 = math.tanh %257 : vector<2x32xf32>
    %259 = arith.mulf %254, %258 : vector<2x32xf32>
    %c0_55 = arith.constant 0 : index
    %c7 = arith.constant 7 : index
    %c0_56 = arith.constant 0 : index
    %260 = vector.load %arg3[%c0_55, %c7, %c0_56] : memref<2x8x32xf32, #tpu.memory_space<vmem>>, vector<2x1x32xf32>
    %261 = vector.shape_cast %260 : vector<2x1x32xf32> to vector<2x32xf32>
    %262 = vector.shape_cast %259 : vector<2x32xf32> to vector<2x1x32xf32>
    tpu.vector_store %arg3[%c0_55, %c7, %c0_56], %262 {strides = array<i32>} : memref<2x8x32xf32, #tpu.memory_space<vmem>>, vector<2x1x32xf32>,
    %c0_57 = arith.constant 0 : index
    %c0_58 = arith.constant 0 : index
    %263 = vector.load %arg4[%c0_57, %c0_58] : memref<2x32xf32, #tpu.memory_space<vmem>>, vector<2x32xf32>
    tpu.vector_store %arg4[%c0_57, %c0_58], %259 {strides = array<i32>} : memref<2x32xf32, #tpu.memory_space<vmem>>, vector<2x32xf32>,
    %c0_59 = arith.constant 0 : index
    %c0_60 = arith.constant 0 : index
    %264 = vector.load %arg5[%c0_59, %c0_60] : memref<2x32xf32, #tpu.memory_space<vmem>>, vector<2x32xf32>
    tpu.vector_store %arg5[%c0_59, %c0_60], %257 {strides = array<i32>} : memref<2x32xf32, #tpu.memory_space<vmem>>, vector<2x32xf32>,
    return
  }
  func.func @transform_0(%arg0: i32) -> (i32, i32, i32) {
    %c0_i32 = arith.constant 0 : i32
    %c0_i32_0 = arith.constant 0 : i32
    %c0_i32_1 = arith.constant 0 : i32
    return %c0_i32, %arg0, %c0_i32_0 : i32, i32, i32
  }
  func.func @transform_1(%arg0: i32) -> (i32, i32) {
    %c0_i32 = arith.constant 0 : i32
    %c0_i32_0 = arith.constant 0 : i32
    %c0_i32_1 = arith.constant 0 : i32
    return %c0_i32, %c0_i32_0 : i32, i32
  }
  func.func @transform_2(%arg0: i32) -> (i32, i32, i32) {
    %c0_i32 = arith.constant 0 : i32
    %c0_i32_0 = arith.constant 0 : i32
    %c0_i32_1 = arith.constant 0 : i32
    return %c0_i32, %arg0, %c0_i32_0 : i32, i32, i32
  }
}

</mosaic_0001>

<bundles_post_ra>
// kernel: tpu_custom_call.1
= control target key start
LH: loop header
LB: loop body
LE: loop exit
PB: predicated region body
PF: predicated region fallthrough
CT: control target
= control target key end

     0   :  { %7 = vsyncpa [#allocation5], 0  ;;  %s1606_s0 = inlined_call_operand.hbm [shape: f32[2,8,128], index: 0, kind: input, shape index: {}]   ;;  %s1607_s1 = inlined_call_operand.hbm [shape: f32[32,128], index: 1, kind: input, shape index: {}]   ;;  %s1608_s2 = inlined_call_operand.hbm [shape: f32[2,8,32], index: 2, kind: output, shape index: {}]  }
   0x1   :  { %8 = vsyncpa [#allocation8], 0 }
   0x2   :  { %9 = vsyncpa [#allocation6], 0  ;;  %s14_s11 = sshll.u32 %s1606_s0, 4  ;;  %s1333_s12 = smov [#allocation4]   ;;  %s15_s11 = int_to_ptr.hbm [resolvable:$true] %s14_s11 }
   0x3   :  { %s16_s13 = sshll.u32 %s1333_s12, 4  ;;  %s27_s16 = sshll.u32 %s1607_s1, 4  ;;  %s17_s13 = int_to_ptr.vmem [resolvable:$true] %s16_s13  ;;  %s28_s16 = int_to_ptr.hbm [resolvable:$true] %s27_s16 }
   0x4   :  { %s1334_s17 = smov 128   ;;  %s1335_s18 = smov 8  }
   0x5   :  { %22 = dma.hbm_to_vmem [thread:$0]  %s15_s11, 256, %s17_s13, [#allocation5], %s1334_s17, %s1334_s17, %s1335_s18  }
   0x6   :  { %s1336_s19 = smov [#allocation7]  }
   0x7   :  { %s29_s20 = sshll.u32 %s1336_s19, 4  ;;  %s30_s20 = int_to_ptr.vmem [resolvable:$true] %s29_s20 }
   0x8   :  { %35 = dma.hbm_to_vmem [thread:$0]  %s28_s16, 512, %s30_s20, [#allocation8], %s1334_s17, %s1334_s17, %s1335_s18  }
   0x9   :  { %1327 = dma.done.wait [#allocation5], 256  }
   0xa   :  { %1328 = vsyncadd [#allocation5], 4294967040 }
   0xb   :  { %1329 = dma.done.wait [#allocation8], 512  }
   0xc   :  { %1330 = vsyncadd [#allocation8], 4294966784  ;;  %vm48_vm0 = vcmask 254976   ;;  %v1337_v0 = vmov 0.0   ;;  %v54_v1 = vld [vmem:[#allocation7 + $0x18] sm:$0xff]  ;;  %v53_v2 = vld [vmem:[#allocation7 + $0x10] sm:$0xff] }
   0xd   :  { %49 = vst.msk [vmem:[#allocation2] sm:$0x3] %vm48_vm0, %v1337_v0  ;;  %75 = vmatpush.msra.mxu0 %v54_v1  ;;  %201 = vmatpush.msra.mxu1 %v54_v1  ;;  %v52_v3 = vld [vmem:[#allocation7 + $0x8] sm:$0xff]  ;;  %v51_v6 = vld [vmem:[#allocation7] sm:$0xff]  ;;  %vm59_vm1 = vcmask 261120   ;;  %s1338_s0 = smov 32  }
   0xe   :  { %50 = vst.msk [vmem:[#allocation3] sm:$0x3] %vm48_vm0, %v1337_v0  ;;  %324 = vmatpush.msra.mxu2 %v54_v1  ;;  %449 = vmatpush.msra.mxu3 %v54_v1  ;;  %v1372_v8 = vld [vmem:[#allocation4 + $0x8] sm:$0xff]  ;;  %v1375_v12 = vld [vmem:[#allocation4] sm:$0xff]  ;;  %s1339_s1 = smov 64   ;;  %vm183_vm10 = vcmask 1041409  }
   0xf   :  { %76 = vmatpush.msra.mxu0 %v53_v2  ;;  %202 = vmatpush.msra.mxu1 %v53_v2  ;;  %s1340_s21 = smov 96   ;;  %s1341_s22 = smov [#allocation9]  }
  0x10   :  { %325 = vmatpush.msra.mxu2 %v53_v2  ;;  %450 = vmatpush.msra.mxu3 %v53_v2  ;;  %s1076_s23 = sshll.u32 %s1341_s22, 4  ;;  %s1078_s26 = sshll.u32 %s1608_s2, 4  ;;  %s1077_s23 = int_to_ptr.vmem [resolvable:$true] %s1076_s23  ;;  %s1079_s26 = int_to_ptr.hbm [resolvable:$true] %s1078_s26 }
  0x11   :  { %77 = vmatpush.msra.mxu0 %v52_v3  ;;  %203 = vmatpush.msra.mxu1 %v52_v3 }
  0x12   :  { %326 = vmatpush.msra.mxu2 %v52_v3  ;;  %451 = vmatpush.msra.mxu3 %v52_v3 }
  0x13   :  { %78 = vmatpush.msra.mxu0 %v51_v6  ;;  %204 = vmatpush.msra.mxu1 %v51_v6 }
  0x14   :  { %v57_v7 = vld [vmem:[#allocation2] sm:$0x3]  ;;  %327 = vmatpush.msra.mxu2 %v51_v6  ;;  %452 = vmatpush.msra.mxu3 %v51_v6 }
  0x15   :  { %v58_v4 = vld [vmem:[#allocation3] sm:$0x3]  ;;  %1092 = vmatmul.msk.f32.vlgmr.msra.gmra.mxu0 %vm59_vm1, %v57_v7  ;;  %699 = vmatpush.msrb.mxu1 %v54_v1 }
  0x16   :  { %v130_v5 = vrot.slane %v58_v4, 1  ;;  %574 = vmatpush.msrb.mxu0 %v54_v1  ;;  %824 = vmatpush.msrb.mxu2 %v54_v1 }
  0x17   :  { %949 = vmatpush.msrb.mxu3 %v54_v1  ;;  %700 = vmatpush.msrb.mxu1 %v53_v2 }
  0x18   :  { %133 = vrot.lane.b32.xlu1 %v130_v5, %s1338_s0  ;;  %575 = vmatpush.msrb.mxu0 %v53_v2 }
  0x19   :  { %825 = vmatpush.msrb.mxu2 %v53_v2  ;;  %701 = vmatpush.msrb.mxu1 %v52_v3 }
  0x1a   :  { %576 = vmatpush.msrb.mxu0 %v52_v3  ;;  %950 = vmatpush.msrb.mxu3 %v53_v2 }
  0x1b   :  { %826 = vmatpush.msrb.mxu2 %v52_v3  ;;  %702 = vmatpush.msrb.mxu1 %v51_v6 }
  0x1c   :  { %577 = vmatpush.msrb.mxu0 %v51_v6  ;;  %951 = vmatpush.msrb.mxu3 %v52_v3 }
  0x1d   :  { %827 = vmatpush.msrb.mxu2 %v51_v6 }
  0x1e   :  { %952 = vmatpush.msrb.mxu3 %v51_v6 }
  0x20   :  { %131 = vrot.lane.b32.xlu1 %v58_v4, %s1338_s0 }
  0x8a   :  { %v134_v46 = vpop.permute.xlu1 %133 }
  0x92   :  { %v80_v9 = vpop.f32.mrf.mxu0  ;;  %v132_v50 = vpop.permute.xlu1 %131 }
  0x93   :  { %v84_v10 = vrot.slane %v80_v9, 1  ;;  %v87_v13 = vadd.f32 %v80_v9, %v1375_v12 }
  0x95   :  { %v88_v11 = vadd.f32 %v84_v10, %v1372_v8  ;;  %v1093_v17 = vmul.f32 -1.442695, %v87_v13 }
  0x97   :  { %1125 = vtanh.f32 %v88_v11  ;;  %v1094_v16 = vmul.f32 -1.442695, %v88_v11 }
  0x98   :  { %1127 = vtanh.f32 %v87_v13 }
  0x99   :  { %1129 = vpow2.f32 %v1094_v16 }
  0x9a   :  { %1131 = vpow2.f32 %v1093_v17 }
  0x9d   :  { %v1126_v14 = vpop.eup %1125 }
  0x9e   :  { %143 = vrot.lane.b32.xlu0 %v1126_v14, %s1339_s1  ;;  %v1128_v15 = vpop.eup %1127 }
  0x9f   :  { %v1130_v18 = vpop.eup %1129 }
  0xa0   :  { %v96_v19 = vadd.f32 1.0, %v1130_v18  ;;  %v1132_v20 = vpop.eup %1131 }
  0xa1   :  { %v95_v21 = vadd.f32 1.0, %v1132_v20 }
  0xa2   :  { %1133 = vrcp.f32 %v96_v19  ;;  %v123_v30 = vand.u32 2147483648, %v96_v19  ;;  %vm117_vm3 = vweird.f32 %v96_v19  ;;  %v121_v31 = vand.u32 2147483647, %v96_v19 }
  0xa3   :  { %1135 = vrcp.f32 %v95_v21  ;;  %v108_v39 = vand.u32 2147483648, %v95_v21  ;;  %vm102_vm7 = vweird.f32 %v95_v21  ;;  %v106_v40 = vand.u32 2147483647, %v95_v21 }
  0xa4   :  { %v124_v34 = vor.u32 1.1754944e-38, %v123_v30  ;;  %vm122_vm5 = vcmp.eq.f32.partialorder %v121_v31, 8.507059e+37 }
  0xa5   :  { %v109_v42 = vor.u32 1.1754944e-38, %v108_v39  ;;  %vm107_vm9 = vcmp.eq.f32.partialorder %v106_v40, 8.507059e+37 }
  0xa6   :  { %141 = vrot.lane.b32.xlu0 %v1128_v15, %s1339_s1 }
  0xa8   :  { %v1134_v22 = vpop.eup %1133 }
  0xa9   :  { %v113_v23 = vmul.f32 %v1134_v22, %v96_v19  ;;  %v1136_v25 = vpop.eup %1135  ;;  %vm118_vm2 = vweird.f32 %v1134_v22 }
  0xaa   :  { %v98_v27 = vmul.f32 %v1136_v25, %v95_v21  ;;  %vm119_vm4 = vmor %vm117_vm3, %vm118_vm2  ;;  %vm103_vm6 = vweird.f32 %v1136_v25 }
  0xab   :  { %v114_v24 = vsub.f32 1.0, %v113_v23  ;;  %vm104_vm8 = vmor %vm102_vm7, %vm103_vm6 }
  0xac   :  { %v99_v29 = vsub.f32 1.0, %v98_v27 }
  0xad   :  { %v115_v26 = vmul.f32 %v1134_v22, %v114_v24 }
  0xae   :  { %v100_v33 = vmul.f32 %v1136_v25, %v99_v29 }
  0xaf   :  { %v116_v28 = vadd.f32 %v1134_v22, %v115_v26 }
  0xb0   :  { %v101_v37 = vadd.f32 %v1136_v25, %v100_v33 }
  0xb1   :  { %v120_v32 = vsel %vm119_vm4, %v1134_v22, %v116_v28 }
  0xb2   :  { %v125_v35 = vsel %vm122_vm5, %v124_v34, %v120_v32  ;;  %v105_v41 = vsel %vm104_vm8, %v1136_v25, %v101_v37 }
  0xb3   :  { %v110_v43 = vsel %vm107_vm9, %v109_v42, %v105_v41  ;;  %v138_v47 = vmul.f32 %v134_v46, %v125_v35 }
  0xb4   :  { %v137_v51 = vmul.f32 %v132_v50, %v110_v43 }
 0x110   :  { %v144_v36 = vpop.permute.xlu0 %143 }
 0x111   :  { %v148_v38 = vmul.f32 %v144_v36, %v125_v35 }
 0x113   :  { %153 = vrot.lane.b32.xlu2 %v148_v38, %s1338_s0 }
 0x118   :  { %v142_v44 = vpop.permute.xlu0 %141 }
 0x119   :  { %v147_v45 = vmul.f32 %v142_v44, %v110_v43 }
 0x11b   :  { %151 = vrot.lane.b32.xlu2 %v147_v45, %s1338_s0 }
 0x16d   :  { %v154_v48 = vpop.permute.xlu2 %153 }
 0x16e   :  { %v1382_v49 = vadd.f32 %v154_v48, %v138_v47 }
 0x170   :  { %1137 = vtanh.f32 %v1382_v49  ;;  %v258_v42 = vrot.slane %v1382_v49, 7 }
 0x175   :  { %v152_v52 = vpop.permute.xlu2 %151 }
 0x176   :  { %v1138_v53 = vpop.eup %1137  ;;  %v1385_v54 = vadd.f32 %v152_v52, %v137_v51 }
 0x177   :  { %165 = vrot.lane.b32.xlu0 %v1138_v53, %s1339_s1 }
 0x178   :  { %1139 = vtanh.f32 %v1385_v54  ;;  %v257_v37 = vrot.slane %v1385_v54, 7 }
 0x17e   :  { %v1140_v55 = vpop.eup %1139 }
 0x17f   :  { %163 = vrot.lane.b32.xlu1 %v1140_v55, %s1339_s1 }
 0x1e9   :  { %v166_v56 = vpop.permute.xlu0 %165 }
 0x1ea   :  { %v1390_v57 = vmul.f32 %v166_v56, %v125_v35 }
 0x1ec   :  { %v182_v59 = vrot.slane %v1390_v57, 7 }
 0x1f1   :  { %v164_v58 = vpop.permute.xlu1 %163 }
 0x1f2   :  { %v1393_v60 = vmul.f32 %v164_v58, %v110_v43 }
 0x1f4   :  { %v184_v61 = vsel %vm183_vm10, %v182_v59, %v1393_v60 }
 0x1f5   :  { %185 = vrot.lane.b32.xlu2 %v184_v61, %s1338_s0 }
 0x24f   :  { %v186_v62 = vpop.permute.xlu2 %185 }
 0x250   :  { %1095 = vmatmul.msk.f32.vlgmr.msra.gmra.mxu1 %vm59_vm1, %v186_v62 }
 0x2cd   :  { %v206_v63 = vpop.f32.mrf.mxu1 }
 0x2ce   :  { %v210_v0 = vrot.slane %v206_v63, 7  ;;  %v214_v1 = vadd.f32 %v206_v63, %v1372_v8 }
 0x2d0   :  { %v213_v2 = vadd.f32 %v210_v0, %v1375_v12  ;;  %1141 = vtanh.f32 %v214_v1  ;;  %v1097_v5 = vmul.f32 -1.442695, %v214_v1 }
 0x2d2   :  { %1143 = vtanh.f32 %v213_v2  ;;  %v1096_v6 = vmul.f32 -1.442695, %v213_v2 }
 0x2d3   :  { %1145 = vpow2.f32 %v1097_v5 }
 0x2d4   :  { %1147 = vpow2.f32 %v1096_v6 }
 0x2d6   :  { %v1142_v3 = vpop.eup %1141 }
 0x2d7   :  { %267 = vrot.lane.b32.xlu1 %v1142_v3, %s1339_s1 }
 0x2d8   :  { %v1144_v4 = vpop.eup %1143 }
 0x2d9   :  { %265 = vrot.lane.b32.xlu0 %v1144_v4, %s1339_s1  ;;  %v1146_v7 = vpop.eup %1145 }
 0x2da   :  { %v1148_v9 = vpop.eup %1147  ;;  %v222_v10 = vadd.f32 1.0, %v1146_v7 }
 0x2db   :  { %v221_v11 = vadd.f32 1.0, %v1148_v9 }
 0x2dc   :  { %1149 = vrcp.f32 %v222_v10  ;;  %v249_v22 = vand.u32 2147483648, %v222_v10  ;;  %vm243_vm12 = vweird.f32 %v222_v10  ;;  %v247_v23 = vand.u32 2147483647, %v222_v10 }
 0x2dd   :  { %1151 = vrcp.f32 %v221_v11  ;;  %v234_v26 = vand.u32 2147483648, %v221_v11  ;;  %vm228_vm15 = vweird.f32 %v221_v11  ;;  %v232_v28 = vand.u32 2147483647, %v221_v11 }
 0x2de   :  { %v250_v27 = vor.u32 1.1754944e-38, %v249_v22  ;;  %vm248_vm0 = vcmp.eq.f32.partialorder %v247_v23, 8.507059e+37 }
 0x2df   :  { %v235_v33 = vor.u32 1.1754944e-38, %v234_v26  ;;  %vm233_vm3 = vcmp.eq.f32.partialorder %v232_v28, 8.507059e+37 }
 0x2e2   :  { %v1150_v13 = vpop.eup %1149 }
 0x2e3   :  { %v1152_v14 = vpop.eup %1151  ;;  %v239_v15 = vmul.f32 %v1150_v13, %v222_v10  ;;  %vm244_vm11 = vweird.f32 %v1150_v13 }
 0x2e4   :  { %v224_v16 = vmul.f32 %v1152_v14, %v221_v11  ;;  %vm245_vm13 = vmor %vm243_vm12, %vm244_vm11  ;;  %vm229_vm14 = vweird.f32 %v1152_v14 }
 0x2e5   :  { %v240_v17 = vsub.f32 1.0, %v239_v15  ;;  %vm230_vm2 = vmor %vm228_vm15, %vm229_vm14 }
 0x2e6   :  { %v225_v18 = vsub.f32 1.0, %v224_v16 }
 0x2e7   :  { %v241_v19 = vmul.f32 %v1150_v13, %v240_v17 }
 0x2e8   :  { %v226_v20 = vmul.f32 %v1152_v14, %v225_v18 }
 0x2e9   :  { %v242_v21 = vadd.f32 %v1150_v13, %v241_v19 }
 0x2ea   :  { %v227_v24 = vadd.f32 %v1152_v14, %v226_v20 }
 0x2eb   :  { %v246_v25 = vsel %vm245_vm13, %v1150_v13, %v242_v21 }
 0x2ec   :  { %v251_v30 = vsel %vm248_vm0, %v250_v27, %v246_v25  ;;  %v231_v31 = vsel %vm230_vm2, %v1152_v14, %v227_v24 }
 0x2ed   :  { %v236_v35 = vsel %vm233_vm3, %v235_v33, %v231_v31  ;;  %v262_v43 = vmul.f32 %v258_v42, %v251_v30 }
 0x2ee   :  { %v261_v38 = vmul.f32 %v257_v37, %v236_v35 }
 0x349   :  { %v268_v29 = vpop.permute.xlu1 %267 }
 0x34a   :  { %v272_v32 = vmul.f32 %v268_v29, %v251_v30 }
 0x34b   :  { %v266_v34 = vpop.permute.xlu0 %265 }
 0x34c   :  { %277 = vrot.lane.b32.xlu0 %v272_v32, %s1338_s0  ;;  %v271_v36 = vmul.f32 %v266_v34, %v236_v35 }
 0x34e   :  { %275 = vrot.lane.b32.xlu2 %v271_v36, %s1338_s0 }
 0x3a8   :  { %v276_v39 = vpop.permute.xlu2 %275 }
 0x3a9   :  { %v1406_v40 = vadd.f32 %v276_v39, %v261_v38 }
 0x3ab   :  { %1153 = vtanh.f32 %v1406_v40  ;;  %v381_v36 = vrot.slane %v1406_v40, 7 }
 0x3b1   :  { %v1154_v41 = vpop.eup %1153 }
 0x3b2   :  { %287 = vrot.lane.b32.xlu1 %v1154_v41, %s1339_s1 }
 0x3be   :  { %v278_v44 = vpop.permute.xlu0 %277 }
 0x3bf   :  { %v1411_v45 = vadd.f32 %v278_v44, %v262_v43 }
 0x3c1   :  { %1155 = vtanh.f32 %v1411_v45  ;;  %v382_v31 = vrot.slane %v1411_v45, 7 }
 0x3c7   :  { %v1156_v46 = vpop.eup %1155 }
 0x3c8   :  { %289 = vrot.lane.b32.xlu2 %v1156_v46, %s1339_s1 }
 0x422   :  { %v290_v47 = vpop.permute.xlu2 %289 }
 0x423   :  { %v1417_v51 = vmul.f32 %v290_v47, %v251_v30 }
 0x424   :  { %v288_v48 = vpop.permute.xlu1 %287 }
 0x425   :  { %v1415_v50 = vmul.f32 %v288_v48, %v236_v35 }
 0x427   :  { %v306_v52 = vrot.slane %v1415_v50, 1 }
 0x429   :  { %v307_v49 = vsel %vm183_vm10, %v1417_v51, %v306_v52 }
 0x42a   :  { %308 = vrot.lane.b32.xlu0 %v307_v49, %s1338_s0 }
 0x49c   :  { %v309_v53 = vpop.permute.xlu0 %308 }
 0x49d   :  { %1098 = vmatmul.msk.f32.vlgmr.msra.gmra.mxu2 %vm59_vm1, %v309_v53 }
 0x520   :  { %v329_v54 = vpop.f32.mrf.mxu2 }
 0x521   :  { %v333_v55 = vrot.slane %v329_v54, 6  ;;  %v334_v56 = vrot.slane %v329_v54, 7 }
 0x523   :  { %v337_v58 = vadd.f32 %v333_v55, %v1375_v12  ;;  %v338_v59 = vadd.f32 %v334_v56, %v1372_v8 }
 0x525   :  { %1157 = vtanh.f32 %v337_v58  ;;  %v1100_v63 = vmul.f32 -1.442695, %v338_v59  ;;  %v1099_v3 = vmul.f32 -1.442695, %v337_v58 }
 0x526   :  { %1159 = vtanh.f32 %v338_v59 }
 0x527   :  { %1161 = vpow2.f32 %v1100_v63 }
 0x52b   :  { %v1158_v61 = vpop.eup %1157 }
 0x52c   :  { %v1160_v62 = vpop.eup %1159  ;;  %389 = vrot.lane.b32.xlu1 %v1158_v61, %s1339_s1 }
 0x52d   :  { %391 = vrot.lane.b32.xlu2 %v1160_v62, %s1339_s1  ;;  %v1162_v0 = vpop.eup %1161 }
 0x52e   :  { %v346_v1 = vadd.f32 1.0, %v1162_v0 }
 0x530   :  { %1163 = vrcp.f32 %v346_v1  ;;  %v373_v11 = vand.u32 2147483648, %v346_v1  ;;  %vm367_vm5 = vweird.f32 %v346_v1  ;;  %v371_v13 = vand.u32 2147483647, %v346_v1 }
 0x531   :  { %1165 = vpow2.f32 %v1099_v3 }
 0x532   :  { %v374_v15 = vor.u32 1.1754944e-38, %v373_v11  ;;  %vm372_vm7 = vcmp.eq.f32.partialorder %v371_v13, 8.507059e+37 }
 0x536   :  { %v1164_v2 = vpop.eup %1163 }
 0x537   :  { %v363_v4 = vmul.f32 %v1164_v2, %v346_v1  ;;  %v1166_v6 = vpop.eup %1165  ;;  %vm368_vm4 = vweird.f32 %v1164_v2 }
 0x538   :  { %v345_v9 = vadd.f32 1.0, %v1166_v6  ;;  %vm369_vm6 = vmor %vm367_vm5, %vm368_vm4 }
 0x539   :  { %v364_v5 = vsub.f32 1.0, %v363_v4 }
 0x53a   :  { %1167 = vrcp.f32 %v345_v9  ;;  %v358_v24 = vand.u32 2147483648, %v345_v9  ;;  %vm352_vm9 = vweird.f32 %v345_v9  ;;  %v356_v25 = vand.u32 2147483647, %v345_v9 }
 0x53b   :  { %v365_v7 = vmul.f32 %v1164_v2, %v364_v5 }
 0x53c   :  { %v359_v27 = vor.u32 1.1754944e-38, %v358_v24  ;;  %vm357_vm12 = vcmp.eq.f32.partialorder %v356_v25, 8.507059e+37 }
 0x53d   :  { %v366_v10 = vadd.f32 %v1164_v2, %v365_v7 }
 0x53f   :  { %v370_v14 = vsel %vm369_vm6, %v1164_v2, %v366_v10 }
 0x540   :  { %v375_v17 = vsel %vm372_vm7, %v374_v15, %v370_v14  ;;  %v1168_v18 = vpop.eup %1167 }
 0x541   :  { %v348_v20 = vmul.f32 %v1168_v18, %v345_v9  ;;  %vm353_vm8 = vweird.f32 %v1168_v18  ;;  %v386_v32 = vmul.f32 %v382_v31, %v375_v17 }
 0x542   :  { %vm354_vm11 = vmor %vm352_vm9, %vm353_vm8 }
 0x543   :  { %v349_v21 = vsub.f32 1.0, %v348_v20 }
 0x545   :  { %v350_v22 = vmul.f32 %v1168_v18, %v349_v21 }
 0x547   :  { %v351_v23 = vadd.f32 %v1168_v18, %v350_v22 }
 0x549   :  { %v355_v26 = vsel %vm354_vm11, %v1168_v18, %v351_v23 }
 0x54a   :  { %v360_v29 = vsel %vm357_vm12, %v359_v27, %v355_v26 }
 0x54b   :  { %v385_v37 = vmul.f32 %v381_v36, %v360_v29 }
 0x587   :  { %v392_v16 = vpop.permute.xlu2 %391 }
 0x588   :  { %v396_v19 = vmul.f32 %v392_v16, %v375_v17 }
 0x58a   :  { %401 = vrot.lane.b32.xlu1 %v396_v19, %s1338_s0 }
 0x59e   :  { %v390_v28 = vpop.permute.xlu1 %389 }
 0x59f   :  { %v395_v30 = vmul.f32 %v390_v28, %v360_v29 }
 0x5a1   :  { %399 = vrot.lane.b32.xlu0 %v395_v30, %s1338_s0 }
 0x5fc   :  { %v402_v33 = vpop.permute.xlu1 %401 }
 0x5fd   :  { %v1431_v34 = vadd.f32 %v402_v33, %v386_v32 }
 0x5ff   :  { %1169 = vtanh.f32 %v1431_v34 }
 0x605   :  { %v1170_v35 = vpop.eup %1169 }
 0x606   :  { %413 = vrot.lane.b32.xlu0 %v1170_v35, %s1339_s1 }
 0x613   :  { %v400_v38 = vpop.permute.xlu0 %399 }
 0x614   :  { %v1436_v39 = vadd.f32 %v400_v38, %v385_v37 }
 0x616   :  { %1171 = vtanh.f32 %v1436_v39  ;;  %v506_v28 = vrot.slane %v1436_v39, 7 }
 0x61c   :  { %v1172_v41 = vpop.eup %1171 }
 0x61d   :  { %411 = vrot.lane.b32.xlu2 %v1172_v41, %s1339_s1 }
 0x677   :  { %v412_v42 = vpop.permute.xlu2 %411 }
 0x678   :  { %v414_v43 = vpop.permute.xlu0 %413  ;;  %v1440_v44 = vmul.f32 %v412_v42, %v360_v29  ;;  %v507_v29 = vrot.slane %v1431_v34, 7 }
 0x679   :  { %v1442_v45 = vmul.f32 %v414_v43, %v375_v17 }
 0x67a   :  { %v430_v46 = vrot.slane %v1440_v44, 2 }
 0x67b   :  { %v431_v47 = vrot.slane %v1442_v45, 1 }
 0x67d   :  { %v432_v40 = vsel %vm183_vm10, %v431_v47, %v430_v46 }
 0x67e   :  { %433 = vrot.lane.b32.xlu1 %v432_v40, %s1338_s0 }
 0x6f0   :  { %v434_v48 = vpop.permute.xlu1 %433 }
 0x6f1   :  { %1101 = vmatmul.msk.f32.vlgmr.msra.gmra.mxu3 %vm59_vm1, %v434_v48 }
 0x774   :  { %v454_v52 = vpop.f32.mrf.mxu3 }
 0x775   :  { %v458_v49 = vrot.slane %v454_v52, 5  ;;  %v459_v53 = vrot.slane %v454_v52, 6 }
 0x777   :  { %v462_v54 = vadd.f32 %v458_v49, %v1375_v12  ;;  %v463_v55 = vadd.f32 %v459_v53, %v1372_v8 }
 0x779   :  { %1173 = vtanh.f32 %v462_v54  ;;  %v1102_v59 = vmul.f32 -1.442695, %v462_v54  ;;  %v1103_v0 = vmul.f32 -1.442695, %v463_v55 }
 0x77a   :  { %1175 = vtanh.f32 %v463_v55 }
 0x77b   :  { %1177 = vpow2.f32 %v1102_v59 }
 0x77f   :  { %v1174_v56 = vpop.eup %1173 }
 0x780   :  { %v1176_v58 = vpop.eup %1175  ;;  %514 = vrot.lane.b32.xlu2 %v1174_v56, %s1339_s1 }
 0x781   :  { %516 = vrot.lane.b32.xlu0 %v1176_v58, %s1339_s1  ;;  %v1178_v61 = vpop.eup %1177 }
 0x782   :  { %v470_v62 = vadd.f32 1.0, %v1178_v61 }
 0x784   :  { %1179 = vrcp.f32 %v470_v62  ;;  %v483_v7 = vand.u32 2147483648, %v470_v62  ;;  %vm477_vm14 = vweird.f32 %v470_v62  ;;  %v481_v9 = vand.u32 2147483647, %v470_v62 }
 0x785   :  { %1181 = vpow2.f32 %v1103_v0 }
 0x786   :  { %v484_v11 = vor.u32 1.1754944e-38, %v483_v7  ;;  %vm482_vm0 = vcmp.eq.f32.partialorder %v481_v9, 8.507059e+37 }
 0x78a   :  { %v1180_v63 = vpop.eup %1179 }
 0x78b   :  { %v473_v1 = vmul.f32 %v1180_v63, %v470_v62  ;;  %v1182_v4 = vpop.eup %1181  ;;  %vm478_vm13 = vweird.f32 %v1180_v63 }
 0x78c   :  { %v471_v5 = vadd.f32 1.0, %v1182_v4  ;;  %vm479_vm15 = vmor %vm477_vm14, %vm478_vm13 }
 0x78d   :  { %v474_v2 = vsub.f32 1.0, %v473_v1 }
 0x78e   :  { %1183 = vrcp.f32 %v471_v5  ;;  %v498_v21 = vand.u32 2147483648, %v471_v5  ;;  %vm492_vm3 = vweird.f32 %v471_v5  ;;  %v496_v22 = vand.u32 2147483647, %v471_v5 }
 0x78f   :  { %v475_v3 = vmul.f32 %v1180_v63, %v474_v2 }
 0x790   :  { %v499_v24 = vor.u32 1.1754944e-38, %v498_v21  ;;  %vm497_vm5 = vcmp.eq.f32.partialorder %v496_v22, 8.507059e+37 }
 0x791   :  { %v476_v6 = vadd.f32 %v1180_v63, %v475_v3 }
 0x793   :  { %v480_v10 = vsel %vm479_vm15, %v1180_v63, %v476_v6 }
 0x794   :  { %v485_v14 = vsel %vm482_vm0, %v484_v11, %v480_v10  ;;  %v1184_v16 = vpop.eup %1183 }
 0x795   :  { %v488_v17 = vmul.f32 %v1184_v16, %v471_v5  ;;  %vm493_vm2 = vweird.f32 %v1184_v16  ;;  %v510_v30 = vmul.f32 %v506_v28, %v485_v14 }
 0x796   :  { %vm494_vm4 = vmor %vm492_vm3, %vm493_vm2 }
 0x797   :  { %v489_v18 = vsub.f32 1.0, %v488_v17 }
 0x799   :  { %v490_v19 = vmul.f32 %v1184_v16, %v489_v18 }
 0x79b   :  { %v491_v20 = vadd.f32 %v1184_v16, %v490_v19 }
 0x79d   :  { %v495_v23 = vsel %vm494_vm4, %v1184_v16, %v491_v20 }
 0x79e   :  { %v500_v26 = vsel %vm497_vm5, %v499_v24, %v495_v23 }
 0x79f   :  { %v511_v31 = vmul.f32 %v507_v29, %v500_v26 }
 0x7da   :  { %v515_v13 = vpop.permute.xlu2 %514 }
 0x7db   :  { %v520_v15 = vmul.f32 %v515_v13, %v485_v14 }
 0x7dd   :  { %524 = vrot.lane.b32.xlu1 %v520_v15, %s1338_s0 }
 0x7f3   :  { %v517_v25 = vpop.permute.xlu0 %516 }
 0x7f4   :  { %v521_v27 = vmul.f32 %v517_v25, %v500_v26 }
 0x7f6   :  { %526 = vrot.lane.b32.xlu2 %v521_v27, %s1338_s0 }
 0x84f   :  { %v525_v32 = vpop.permute.xlu1 %524 }
 0x850   :  { %v527_v33 = vpop.permute.xlu2 %526  ;;  %v1457_v35 = vadd.f32 %v525_v32, %v510_v30 }
 0x851   :  { %v1459_v36 = vadd.f32 %v527_v33, %v511_v31 }
 0x852   :  { %1185 = vtanh.f32 %v1457_v35  ;;  %v631_v27 = vrot.slane %v1457_v35, 7 }
 0x853   :  { %1187 = vtanh.f32 %v1459_v36  ;;  %v632_v32 = vrot.slane %v1459_v36, 7 }
 0x858   :  { %v1186_v37 = vpop.eup %1185 }
 0x859   :  { %v1188_v38 = vpop.eup %1187  ;;  %536 = vrot.lane.b32.xlu0 %v1186_v37, %s1339_s1 }
 0x85a   :  { %538 = vrot.lane.b32.xlu1 %v1188_v38, %s1339_s1 }
 0x8cb   :  { %v537_v39 = vpop.permute.xlu0 %536 }
 0x8cc   :  { %v539_v34 = vpop.permute.xlu1 %538  ;;  %v1465_v41 = vmul.f32 %v537_v39, %v485_v14 }
 0x8cd   :  { %v1467_v42 = vmul.f32 %v539_v34, %v500_v26 }
 0x8ce   :  { %v555_v43 = vrot.slane %v1465_v41, 3 }
 0x8cf   :  { %v556_v46 = vrot.slane %v1467_v42, 2 }
 0x8d1   :  { %v557_v47 = vsel %vm183_vm10, %v556_v46, %v555_v43 }
 0x8d2   :  { %558 = vrot.lane.b32.xlu2 %v557_v47, %s1338_s0 }
 0x92c   :  { %v559_v40 = vpop.permute.xlu2 %558 }
 0x92d   :  { %1104 = vmatmul.msk.f32.vlgmr.msrb.gmra.mxu0 %vm59_vm1, %v559_v40 }
 0x9aa   :  { %v579_v48 = vpop.f32.mrf.mxu0 }
 0x9ab   :  { %v583_v52 = vrot.slane %v579_v48, 4  ;;  %v584_v49 = vrot.slane %v579_v48, 5 }
 0x9ad   :  { %v587_v53 = vadd.f32 %v583_v52, %v1375_v12  ;;  %v588_v54 = vadd.f32 %v584_v49, %v1372_v8 }
 0x9af   :  { %1189 = vtanh.f32 %v587_v53  ;;  %v1105_v58 = vmul.f32 -1.442695, %v587_v53  ;;  %v1106_v59 = vmul.f32 -1.442695, %v588_v54 }
 0x9b0   :  { %1191 = vtanh.f32 %v588_v54 }
 0x9b1   :  { %1193 = vpow2.f32 %v1105_v58 }
 0x9b2   :  { %1195 = vpow2.f32 %v1106_v59 }
 0x9b5   :  { %v1190_v55 = vpop.eup %1189 }
 0x9b6   :  { %v1192_v56 = vpop.eup %1191  ;;  %639 = vrot.lane.b32.xlu0 %v1190_v55, %s1339_s1 }
 0x9b7   :  { %641 = vrot.lane.b32.xlu1 %v1192_v56, %s1339_s1  ;;  %v1194_v61 = vpop.eup %1193 }
 0x9b8   :  { %v1196_v62 = vpop.eup %1195  ;;  %v595_v63 = vadd.f32 1.0, %v1194_v61 }
 0x9b9   :  { %v596_v0 = vadd.f32 1.0, %v1196_v62 }
 0x9ba   :  { %1197 = vrcp.f32 %v595_v63  ;;  %v608_v13 = vand.u32 2147483648, %v595_v63  ;;  %vm602_vm8 = vweird.f32 %v595_v63  ;;  %v606_v15 = vand.u32 2147483647, %v595_v63 }
 0x9bb   :  { %1199 = vrcp.f32 %v596_v0  ;;  %v623_v14 = vand.u32 2147483648, %v596_v0  ;;  %vm617_vm9 = vweird.f32 %v596_v0  ;;  %v621_v16 = vand.u32 2147483647, %v596_v0 }
 0x9bc   :  { %v609_v19 = vor.u32 1.1754944e-38, %v608_v13  ;;  %vm607_vm13 = vcmp.eq.f32.partialorder %v606_v15, 8.507059e+37 }
 0x9bd   :  { %v624_v20 = vor.u32 1.1754944e-38, %v623_v14  ;;  %vm622_vm14 = vcmp.eq.f32.partialorder %v621_v16, 8.507059e+37 }
 0x9c0   :  { %v1198_v1 = vpop.eup %1197 }
 0x9c1   :  { %v1200_v2 = vpop.eup %1199  ;;  %v598_v3 = vmul.f32 %v1198_v1, %v595_v63  ;;  %vm603_vm6 = vweird.f32 %v1198_v1 }
 0x9c2   :  { %v613_v4 = vmul.f32 %v1200_v2, %v596_v0  ;;  %vm618_vm7 = vweird.f32 %v1200_v2  ;;  %vm604_vm11 = vmor %vm602_vm8, %vm603_vm6 }
 0x9c3   :  { %v599_v5 = vsub.f32 1.0, %v598_v3  ;;  %vm619_vm12 = vmor %vm617_vm9, %vm618_vm7 }
 0x9c4   :  { %v614_v6 = vsub.f32 1.0, %v613_v4 }
 0x9c5   :  { %v600_v7 = vmul.f32 %v1198_v1, %v599_v5 }
 0x9c6   :  { %v615_v9 = vmul.f32 %v1200_v2, %v614_v6 }
 0x9c7   :  { %v601_v10 = vadd.f32 %v1198_v1, %v600_v7 }
 0x9c8   :  { %v616_v11 = vadd.f32 %v1200_v2, %v615_v9 }
 0x9c9   :  { %v605_v17 = vsel %vm604_vm11, %v1198_v1, %v601_v10 }
 0x9ca   :  { %v620_v18 = vsel %vm619_vm12, %v1200_v2, %v616_v11  ;;  %v610_v22 = vsel %vm607_vm13, %v609_v19, %v605_v17 }
 0x9cb   :  { %v625_v24 = vsel %vm622_vm14, %v624_v20, %v620_v18  ;;  %v635_v28 = vmul.f32 %v631_v27, %v610_v22 }
 0x9cc   :  { %v636_v33 = vmul.f32 %v632_v32, %v625_v24 }
 0xa28   :  { %v640_v21 = vpop.permute.xlu0 %639 }
 0xa29   :  { %v642_v23 = vpop.permute.xlu1 %641  ;;  %v645_v25 = vmul.f32 %v640_v21, %v610_v22 }
 0xa2a   :  { %v646_v26 = vmul.f32 %v642_v23, %v625_v24 }
 0xa2b   :  { %649 = vrot.lane.b32.xlu2 %v645_v25, %s1338_s0 }
 0xa2c   :  { %651 = vrot.lane.b32.xlu0 %v646_v26, %s1338_s0 }
 0xa85   :  { %v650_v29 = vpop.permute.xlu2 %649 }
 0xa86   :  { %v1481_v30 = vadd.f32 %v650_v29, %v635_v28 }
 0xa88   :  { %1201 = vtanh.f32 %v1481_v30 }
 0xa8e   :  { %v1202_v31 = vpop.eup %1201 }
 0xa8f   :  { %661 = vrot.lane.b32.xlu1 %v1202_v31, %s1339_s1 }
 0xa9e   :  { %v652_v37 = vpop.permute.xlu0 %651 }
 0xa9f   :  { %v1486_v38 = vadd.f32 %v652_v37, %v636_v33  ;;  %v756_v37 = vrot.slane %v1481_v30, 7 }
 0xaa1   :  { %1203 = vtanh.f32 %v1486_v38  ;;  %v757_v28 = vrot.slane %v1486_v38, 7 }
 0xaa7   :  { %v1204_v39 = vpop.eup %1203 }
 0xaa8   :  { %663 = vrot.lane.b32.xlu2 %v1204_v39, %s1339_s1 }
 0xb01   :  { %v662_v35 = vpop.permute.xlu1 %661 }
 0xb02   :  { %v664_v34 = vpop.permute.xlu2 %663  ;;  %v1490_v43 = vmul.f32 %v662_v35, %v610_v22 }
 0xb03   :  { %v1492_v46 = vmul.f32 %v664_v34, %v625_v24 }
 0xb04   :  { %v680_v47 = vrot.slane %v1490_v43, 4 }
 0xb05   :  { %v681_v40 = vrot.slane %v1492_v46, 3 }
 0xb07   :  { %v682_v36 = vsel %vm183_vm10, %v681_v40, %v680_v47 }
 0xb08   :  { %683 = vrot.lane.b32.xlu0 %v682_v36, %s1338_s0 }
 0xb7a   :  { %v684_v48 = vpop.permute.xlu0 %683 }
 0xb7b   :  { %1107 = vmatmul.msk.f32.vlgmr.msrb.gmra.mxu1 %vm59_vm1, %v684_v48 }
 0xbf8   :  { %v704_v52 = vpop.f32.mrf.mxu1 }
 0xbf9   :  { %v708_v49 = vrot.slane %v704_v52, 3  ;;  %v709_v53 = vrot.slane %v704_v52, 4 }
 0xbfb   :  { %v712_v54 = vadd.f32 %v708_v49, %v1375_v12  ;;  %v713_v55 = vadd.f32 %v709_v53, %v1372_v8 }
 0xbfd   :  { %1205 = vtanh.f32 %v712_v54  ;;  %v1109_v59 = vmul.f32 -1.442695, %v713_v55  ;;  %v1108_v0 = vmul.f32 -1.442695, %v712_v54 }
 0xbfe   :  { %1207 = vtanh.f32 %v713_v55 }
 0xbff   :  { %1209 = vpow2.f32 %v1109_v59 }
 0xc03   :  { %v1206_v56 = vpop.eup %1205 }
 0xc04   :  { %v1208_v58 = vpop.eup %1207  ;;  %764 = vrot.lane.b32.xlu1 %v1206_v56, %s1339_s1 }
 0xc05   :  { %766 = vrot.lane.b32.xlu2 %v1208_v58, %s1339_s1  ;;  %v1210_v61 = vpop.eup %1209 }
 0xc06   :  { %v721_v62 = vadd.f32 1.0, %v1210_v61 }
 0xc08   :  { %1211 = vrcp.f32 %v721_v62  ;;  %v748_v7 = vand.u32 2147483648, %v721_v62  ;;  %vm742_vm0 = vweird.f32 %v721_v62  ;;  %v746_v9 = vand.u32 2147483647, %v721_v62 }
 0xc09   :  { %1213 = vpow2.f32 %v1108_v0 }
 0xc0a   :  { %v749_v11 = vor.u32 1.1754944e-38, %v748_v7  ;;  %vm747_vm3 = vcmp.eq.f32.partialorder %v746_v9, 8.507059e+37 }
 0xc0e   :  { %v1212_v63 = vpop.eup %1211 }
 0xc0f   :  { %v738_v1 = vmul.f32 %v1212_v63, %v721_v62  ;;  %v1214_v3 = vpop.eup %1213  ;;  %vm743_vm15 = vweird.f32 %v1212_v63 }
 0xc10   :  { %v720_v5 = vadd.f32 1.0, %v1214_v3  ;;  %vm744_vm2 = vmor %vm742_vm0, %vm743_vm15 }
 0xc11   :  { %v739_v2 = vsub.f32 1.0, %v738_v1 }
 0xc12   :  { %1215 = vrcp.f32 %v720_v5  ;;  %v733_v21 = vand.u32 2147483648, %v720_v5  ;;  %vm727_vm5 = vweird.f32 %v720_v5  ;;  %v731_v22 = vand.u32 2147483647, %v720_v5 }
 0xc13   :  { %v740_v4 = vmul.f32 %v1212_v63, %v739_v2 }
 0xc14   :  { %v734_v24 = vor.u32 1.1754944e-38, %v733_v21  ;;  %vm732_vm7 = vcmp.eq.f32.partialorder %v731_v22, 8.507059e+37 }
 0xc15   :  { %v741_v6 = vadd.f32 %v1212_v63, %v740_v4 }
 0xc17   :  { %v745_v10 = vsel %vm744_vm2, %v1212_v63, %v741_v6 }
 0xc18   :  { %v750_v14 = vsel %vm747_vm3, %v749_v11, %v745_v10  ;;  %v1216_v15 = vpop.eup %1215 }
 0xc19   :  { %v723_v17 = vmul.f32 %v1216_v15, %v720_v5  ;;  %vm728_vm4 = vweird.f32 %v1216_v15  ;;  %v761_v29 = vmul.f32 %v757_v28, %v750_v14 }
 0xc1a   :  { %vm729_vm6 = vmor %vm727_vm5, %vm728_vm4 }
 0xc1b   :  { %v724_v18 = vsub.f32 1.0, %v723_v17 }
 0xc1d   :  { %v725_v19 = vmul.f32 %v1216_v15, %v724_v18 }
 0xc1f   :  { %v726_v20 = vadd.f32 %v1216_v15, %v725_v19 }
 0xc21   :  { %v730_v23 = vsel %vm729_vm6, %v1216_v15, %v726_v20 }
 0xc22   :  { %v735_v26 = vsel %vm732_vm7, %v734_v24, %v730_v23 }
 0xc23   :  { %v760_v39 = vmul.f32 %v756_v37, %v735_v26 }
 0xc5f   :  { %v767_v13 = vpop.permute.xlu2 %766 }
 0xc60   :  { %v771_v16 = vmul.f32 %v767_v13, %v750_v14 }
 0xc62   :  { %776 = vrot.lane.b32.xlu1 %v771_v16, %s1338_s0 }
 0xc76   :  { %v765_v25 = vpop.permute.xlu1 %764 }
 0xc77   :  { %v770_v27 = vmul.f32 %v765_v25, %v735_v26 }
 0xc79   :  { %774 = vrot.lane.b32.xlu0 %v770_v27, %s1338_s0 }
 0xcd4   :  { %v777_v31 = vpop.permute.xlu1 %776 }
 0xcd5   :  { %v1506_v32 = vadd.f32 %v777_v31, %v761_v29 }
 0xcd7   :  { %1217 = vtanh.f32 %v1506_v32  ;;  %v882_v31 = vrot.slane %v1506_v32, 7 }
 0xcdd   :  { %v1218_v33 = vpop.eup %1217 }
 0xcde   :  { %788 = vrot.lane.b32.xlu0 %v1218_v33, %s1339_s1 }
 0xceb   :  { %v775_v35 = vpop.permute.xlu0 %774 }
 0xcec   :  { %v1511_v34 = vadd.f32 %v775_v35, %v760_v39 }
 0xcee   :  { %1219 = vtanh.f32 %v1511_v34  ;;  %v881_v29 = vrot.slane %v1511_v34, 7 }
 0xcf4   :  { %v1220_v47 = vpop.eup %1219 }
 0xcf5   :  { %786 = vrot.lane.b32.xlu2 %v1220_v47, %s1339_s1 }
 0xd4f   :  { %v787_v38 = vpop.permute.xlu2 %786 }
 0xd50   :  { %v789_v40 = vpop.permute.xlu0 %788  ;;  %v1515_v36 = vmul.f32 %v787_v38, %v735_v26 }
 0xd51   :  { %v1517_v48 = vmul.f32 %v789_v40, %v750_v14 }
 0xd52   :  { %v805_v52 = vrot.slane %v1515_v36, 5 }
 0xd53   :  { %v806_v49 = vrot.slane %v1517_v48, 4 }
 0xd55   :  { %v807_v30 = vsel %vm183_vm10, %v806_v49, %v805_v52 }
 0xd56   :  { %808 = vrot.lane.b32.xlu1 %v807_v30, %s1338_s0 }
 0xdc8   :  { %v809_v53 = vpop.permute.xlu1 %808 }
 0xdc9   :  { %1110 = vmatmul.msk.f32.vlgmr.msrb.gmra.mxu2 %vm59_vm1, %v809_v53 }
 0xe4c   :  { %v829_v54 = vpop.f32.mrf.mxu2 }
 0xe4d   :  { %v833_v55 = vrot.slane %v829_v54, 2  ;;  %v834_v56 = vrot.slane %v829_v54, 3 }
 0xe4f   :  { %v837_v58 = vadd.f32 %v833_v55, %v1375_v12  ;;  %v838_v59 = vadd.f32 %v834_v56, %v1372_v8 }
 0xe51   :  { %1221 = vtanh.f32 %v837_v58  ;;  %v1111_v63 = vmul.f32 -1.442695, %v837_v58  ;;  %v1112_v3 = vmul.f32 -1.442695, %v838_v59 }
 0xe52   :  { %1223 = vtanh.f32 %v838_v59 }
 0xe53   :  { %1225 = vpow2.f32 %v1111_v63 }
 0xe57   :  { %v1222_v61 = vpop.eup %1221 }
 0xe58   :  { %v1224_v62 = vpop.eup %1223  ;;  %889 = vrot.lane.b32.xlu2 %v1222_v61, %s1339_s1 }
 0xe59   :  { %891 = vrot.lane.b32.xlu0 %v1224_v62, %s1339_s1  ;;  %v1226_v0 = vpop.eup %1225  ;;  %v1253_v62 = vld [vmem:[#allocation4] sm:$0xff] }
 0xe5a   :  { %v845_v1 = vadd.f32 1.0, %v1226_v0  ;;  %v1254_v0 = vld [vmem:[#allocation4 + $0x8] sm:$0xff] }
 0xe5c   :  { %1227 = vrcp.f32 %v845_v1  ;;  %v858_v9 = vand.u32 2147483648, %v845_v1  ;;  %vm852_vm9 = vweird.f32 %v845_v1  ;;  %v856_v10 = vand.u32 2147483647, %v845_v1 }
 0xe5d   :  { %1229 = vpow2.f32 %v1112_v3 }
 0xe5e   :  { %v859_v13 = vor.u32 1.1754944e-38, %v858_v9  ;;  %vm857_vm12 = vcmp.eq.f32.partialorder %v856_v10, 8.507059e+37 }
 0xe62   :  { %v1228_v2 = vpop.eup %1227 }
 0xe63   :  { %v848_v4 = vmul.f32 %v1228_v2, %v845_v1  ;;  %v1230_v8 = vpop.eup %1229  ;;  %vm853_vm8 = vweird.f32 %v1228_v2 }
 0xe64   :  { %v846_v6 = vadd.f32 1.0, %v1230_v8  ;;  %vm854_vm11 = vmor %vm852_vm9, %vm853_vm8  ;;  %vm179_vm8 = vcmask 253952   ;;  %vm303_vm9 = vcmask 254977  }
 0xe65   :  { %v849_v12 = vsub.f32 1.0, %v848_v4 }
 0xe66   :  { %1231 = vrcp.f32 %v846_v6  ;;  %v873_v22 = vand.u32 2147483648, %v846_v6  ;;  %vm867_vm14 = vweird.f32 %v846_v6  ;;  %v871_v23 = vand.u32 2147483647, %v846_v6 }
 0xe67   :  { %v850_v5 = vmul.f32 %v1228_v2, %v849_v12 }
 0xe68   :  { %v874_v25 = vor.u32 1.1754944e-38, %v873_v22  ;;  %vm872_vm0 = vcmp.eq.f32.partialorder %v871_v23, 8.507059e+37 }
 0xe69   :  { %v851_v7 = vadd.f32 %v1228_v2, %v850_v5 }
 0xe6b   :  { %v855_v11 = vsel %vm854_vm11, %v1228_v2, %v851_v7  ;;  %vm552_vm11 = vcmask 257027  }
 0xe6c   :  { %v860_v15 = vsel %vm857_vm12, %v859_v13, %v855_v11  ;;  %v1232_v17 = vpop.eup %1231  ;;  %vm677_vm12 = vcmask 258052  }
 0xe6d   :  { %v863_v18 = vmul.f32 %v1232_v17, %v846_v6  ;;  %vm868_vm13 = vweird.f32 %v1232_v17  ;;  %v885_v33 = vmul.f32 %v881_v29, %v860_v15 }
 0xe6e   :  { %vm869_vm15 = vmor %vm867_vm14, %vm868_vm13  ;;  %vm927_vm13 = vcmask 260102   ;;  %vm427_vm14 = vcmask 256002  }
 0xe6f   :  { %v864_v19 = vsub.f32 1.0, %v863_v18 }
 0xe71   :  { %v865_v20 = vmul.f32 %v1232_v17, %v864_v19 }
 0xe73   :  { %v866_v21 = vadd.f32 %v1232_v17, %v865_v20 }
 0xe75   :  { %v870_v24 = vsel %vm869_vm15, %v1232_v17, %v866_v21  ;;  %vm802_vm15 = vcmask 259077  }
 0xe76   :  { %v875_v27 = vsel %vm872_vm0, %v874_v25, %v870_v24  ;;  %vm1052_vm0 = vcmask 261127  }
 0xe77   :  { %v886_v37 = vmul.f32 %v882_v31, %v875_v27 }
 0xeb2   :  { %v890_v14 = vpop.permute.xlu2 %889 }
 0xeb3   :  { %v895_v16 = vmul.f32 %v890_v14, %v860_v15 }
 0xeb5   :  { %899 = vrot.lane.b32.xlu1 %v895_v16, %s1338_s0 }
 0xecb   :  { %v892_v26 = vpop.permute.xlu0 %891 }
 0xecc   :  { %v896_v28 = vmul.f32 %v892_v26, %v875_v27 }
 0xece   :  { %901 = vrot.lane.b32.xlu2 %v896_v28, %s1338_s0 }
 0xf27   :  { %v900_v39 = vpop.permute.xlu1 %899 }
 0xf28   :  { %v902_v35 = vpop.permute.xlu2 %901  ;;  %v1532_v47 = vadd.f32 %v900_v39, %v885_v33 }
 0xf29   :  { %v1534_v38 = vadd.f32 %v902_v35, %v886_v37 }
 0xf2a   :  { %1233 = vtanh.f32 %v1532_v47 }
 0xf2b   :  { %1235 = vtanh.f32 %v1534_v38  ;;  %v1007_v35 = vrot.slane %v1534_v38, 7 }
 0xf30   :  { %v1234_v40 = vpop.eup %1233 }
 0xf31   :  { %v1236_v52 = vpop.eup %1235  ;;  %911 = vrot.lane.b32.xlu0 %v1234_v40, %s1339_s1 }
 0xf32   :  { %913 = vrot.lane.b32.xlu1 %v1236_v52, %s1339_s1 }
 0xfa3   :  { %v912_v34 = vpop.permute.xlu0 %911 }
 0xfa4   :  { %v914_v32 = vpop.permute.xlu1 %913  ;;  %v1540_v49 = vmul.f32 %v912_v34, %v860_v15 }
 0xfa5   :  { %v1542_v30 = vmul.f32 %v914_v32, %v875_v27 }
 0xfa6   :  { %v930_v53 = vrot.slane %v1540_v49, 6 }
 0xfa7   :  { %v931_v54 = vrot.slane %v1542_v30, 5 }
 0xfa9   :  { %v932_v55 = vsel %vm183_vm10, %v931_v54, %v930_v53 }
 0xfaa   :  { %933 = vrot.lane.b32.xlu2 %v932_v55, %s1338_s0 }
0x1004   :  { %v934_v56 = vpop.permute.xlu2 %933 }
0x1005   :  { %1113 = vmatmul.msk.f32.vlgmr.msrb.gmra.mxu3 %vm59_vm1, %v934_v56 }
0x1088   :  { %v954_v58 = vpop.f32.mrf.mxu3 }
0x1089   :  { %v958_v59 = vrot.slane %v954_v58, 1  ;;  %v959_v61 = vrot.slane %v954_v58, 2 }
0x108b   :  { %v962_v63 = vadd.f32 %v1253_v62, %v958_v59  ;;  %v963_v1 = vadd.f32 %v1254_v0, %v959_v61 }
0x108d   :  { %1237 = vtanh.f32 %v962_v63  ;;  %v1114_v4 = vmul.f32 -1.442695, %v962_v63  ;;  %v1115_v12 = vmul.f32 -1.442695, %v963_v1 }
0x108e   :  { %1239 = vtanh.f32 %v963_v1 }
0x108f   :  { %1241 = vpow2.f32 %v1114_v4 }
0x1090   :  { %1243 = vpow2.f32 %v1115_v12 }
0x1093   :  { %v1238_v2 = vpop.eup %1237 }
0x1094   :  { %v1240_v3 = vpop.eup %1239  ;;  %1014 = vrot.lane.b32.xlu1 %v1238_v2, %s1339_s1 }
0x1095   :  { %1016 = vrot.lane.b32.xlu0 %v1240_v3, %s1339_s1  ;;  %v1242_v5 = vpop.eup %1241 }
0x1096   :  { %v1244_v8 = vpop.eup %1243  ;;  %v970_v6 = vadd.f32 1.0, %v1242_v5 }
0x1097   :  { %v971_v7 = vadd.f32 1.0, %v1244_v8 }
0x1098   :  { %1245 = vrcp.f32 %v970_v6  ;;  %v983_v20 = vand.u32 2147483648, %v970_v6  ;;  %vm977_vm2 = vweird.f32 %v970_v6  ;;  %v981_v22 = vand.u32 2147483647, %v970_v6 }
0x1099   :  { %1247 = vrcp.f32 %v971_v7  ;;  %v998_v21 = vand.u32 2147483648, %v971_v7  ;;  %vm992_vm3 = vweird.f32 %v971_v7  ;;  %v996_v23 = vand.u32 2147483647, %v971_v7 }
0x109a   :  { %v984_v26 = vor.u32 1.1754944e-38, %v983_v20  ;;  %vm982_vm6 = vcmp.eq.f32.partialorder %v981_v22, 8.507059e+37 }
0x109b   :  { %v999_v27 = vor.u32 1.1754944e-38, %v998_v21  ;;  %vm997_vm7 = vcmp.eq.f32.partialorder %v996_v23, 8.507059e+37 }
0x109e   :  { %v1246_v9 = vpop.eup %1245 }
0x109f   :  { %v1248_v10 = vpop.eup %1247  ;;  %v973_v11 = vmul.f32 %v1246_v9, %v970_v6  ;;  %vm978_vm1 = vweird.f32 %v1246_v9 }
0x10a0   :  { %v988_v13 = vmul.f32 %v1248_v10, %v971_v7  ;;  %vm993_vm10 = vweird.f32 %v1248_v10  ;;  %vm979_vm4 = vmor %vm977_vm2, %vm978_vm1 }
0x10a1   :  { %v974_v14 = vsub.f32 1.0, %v973_v11  ;;  %vm994_vm5 = vmor %vm992_vm3, %vm993_vm10 }
0x10a2   :  { %v989_v15 = vsub.f32 1.0, %v988_v13 }
0x10a3   :  { %v975_v16 = vmul.f32 %v1246_v9, %v974_v14 }
0x10a4   :  { %v990_v17 = vmul.f32 %v1248_v10, %v989_v15 }
0x10a5   :  { %v976_v18 = vadd.f32 %v1246_v9, %v975_v16 }
0x10a6   :  { %v991_v19 = vadd.f32 %v1248_v10, %v990_v17 }
0x10a7   :  { %v980_v24 = vsel %vm979_vm4, %v1246_v9, %v976_v18 }
0x10a8   :  { %v995_v25 = vsel %vm994_vm5, %v1248_v10, %v991_v19  ;;  %v985_v29 = vsel %vm982_vm6, %v984_v26, %v980_v24 }
0x10a9   :  { %v1000_v33 = vsel %vm997_vm7, %v999_v27, %v995_v25 }
0x10aa   :  { %v1011_v40 = vmul.f32 %v1007_v35, %v1000_v33 }
0x1106   :  { %v1015_v28 = vpop.permute.xlu1 %1014 }
0x1107   :  { %v1017_v31 = vpop.permute.xlu0 %1016  ;;  %v1020_v37 = vmul.f32 %v1015_v28, %v985_v29 }
0x1108   :  { %v1021_v39 = vmul.f32 %v1017_v31, %v1000_v33 }
0x1109   :  { %1024 = vrot.lane.b32.xlu0 %v1020_v37, %s1338_s0 }
0x110a   :  { %1026 = vrot.lane.b32.xlu2 %v1021_v39, %s1338_s0 }
0x1111   :  { %173 = vrot.lane.b32.xlu0 %v1393_v60, %s1338_s0  ;;  %v1006_v60 = vrot.slane %v1532_v47, 7 }
0x1119   :  { %299 = vrot.lane.b32.xlu0 %v1417_v51, %s1338_s0  ;;  %v1010_v51 = vmul.f32 %v1006_v60, %v985_v29 }
0x1121   :  { %546 = vrot.lane.b32.xlu0 %v1465_v41, %s1338_s0 }
0x1129   :  { %673 = vrot.lane.b32.xlu0 %v1492_v46, %s1338_s0 }
0x1131   :  { %921 = vrot.lane.b32.xlu0 %v1540_v49, %s1338_s0 }
0x1164   :  { %v1027_v52 = vpop.permute.xlu2 %1026 }
0x1165   :  { %v1031_v34 = vadd.f32 %v1027_v52, %v1011_v40 }
0x1167   :  { %1249 = vtanh.f32 %v1031_v34  ;;  %v1063_v55 = vrot.slane %v1031_v34, 7 }
0x116d   :  { %v1250_v32 = vpop.eup %1249 }
0x116e   :  { %1038 = vrot.lane.b32.xlu1 %v1250_v32, %s1339_s1 }
0x1176   :  { %175 = vrot.lane.b32.xlu1 %v1390_v57, %s1338_s0 }
0x117b   :  { %v1025_v41 = vpop.permute.xlu0 %1024 }
0x117c   :  { %v1030_v46 = vadd.f32 %v1025_v41, %v1010_v51 }
0x117e   :  { %1251 = vtanh.f32 %v1030_v46  ;;  %421 = vrot.lane.b32.xlu1 %v1440_v44, %s1338_s0 }
0x1183   :  { %v174_v38 = vpop.permute.xlu0 %173 }
0x1184   :  { %v1252_v49 = vpop.eup %1251  ;;  %180 = vst.msk [vmem:[#allocation9] sm:$0x1] %vm179_vm8, %v174_v38 }
0x1185   :  { %1036 = vrot.lane.b32.xlu2 %v1252_v49, %s1339_s1 }
0x1186   :  { %548 = vrot.lane.b32.xlu1 %v1467_v42, %s1338_s0 }
0x118b   :  { %v300_v57 = vpop.permute.xlu0 %299 }
0x118c   :  { %305 = vst.msk [vmem:[#allocation9 + $0x8] sm:$0x2] %vm303_vm9, %v300_v57 }
0x118d   :  { %297 = vrot.lane.b32.xlu2 %v1415_v50, %s1338_s0 }
0x118e   :  { %796 = vrot.lane.b32.xlu1 %v1515_v36, %s1338_s0 }
0x1193   :  { %v547_v44 = vpop.permute.xlu0 %546 }
0x1194   :  { %553 = vst.msk [vmem:[#allocation9] sm:$0x8] %vm552_vm11, %v547_v44 }
0x1195   :  { %423 = vrot.lane.b32.xlu2 %v1442_v45, %s1338_s0 }
0x1196   :  { %923 = vrot.lane.b32.xlu1 %v1542_v30, %s1338_s0 }
0x119b   :  { %v674_v42 = vpop.permute.xlu0 %673 }
0x119c   :  { %679 = vst.msk [vmem:[#allocation9 + $0x8] sm:$0x10] %vm677_vm12, %v674_v42 }
0x119d   :  { %671 = vrot.lane.b32.xlu2 %v1490_v43, %s1338_s0 }
0x11a3   :  { %v922_v50 = vpop.permute.xlu0 %921 }
0x11a4   :  { %928 = vst.msk [vmem:[#allocation9] sm:$0x40] %vm927_vm13, %v922_v50 }
0x11a5   :  { %798 = vrot.lane.b32.xlu2 %v1517_v48, %s1338_s0 }
0x11df   :  { %v1037_v36 = vpop.permute.xlu2 %1036 }
0x11e0   :  { %v1039_v47 = vpop.permute.xlu1 %1038  ;;  %v1042_v45 = vmul.f32 %v1037_v36, %v985_v29 }
0x11e1   :  { %v1043_v53 = vmul.f32 %v1039_v47, %v1000_v33 }
0x11e2   :  { %1046 = vrot.lane.b32.xlu2 %v1042_v45, %s1338_s0 }
0x11e3   :  { %v1055_v30 = vrot.slane %v1043_v53, 7  ;;  %1048 = vrot.lane.b32.xlu0 %v1043_v53, %s1338_s0 }
0x11e5   :  { %1056 = vrot.lane.b32.xlu1 %v1055_v30, %s1338_s0 }
0x11e7   :  { %v298_v54 = vpop.permute.xlu2 %297 }
0x11e8   :  { %v176_v43 = vpop.permute.xlu1 %175  ;;  %304 = vst.msk [vmem:[#allocation9] sm:$0x2] %vm303_vm9, %v298_v54 }
0x11e9   :  { %181 = vst.msk [vmem:[#allocation9 + $0x8] sm:$0x1] %vm179_vm8, %v176_v43 }
0x11ea   :  { %1064 = vrot.lane.b32.xlu2 %v1030_v46, %s1340_s21 }
0x11eb   :  { %1066 = vrot.lane.b32.xlu0 %v1063_v55, %s1340_s21 }
0x11ef   :  { %v424_v48 = vpop.permute.xlu2 %423 }
0x11f0   :  { %v422_v56 = vpop.permute.xlu1 %421  ;;  %429 = vst.msk [vmem:[#allocation9 + $0x8] sm:$0x4] %vm427_vm14, %v424_v48 }
0x11f1   :  { %428 = vst.msk [vmem:[#allocation9] sm:$0x4] %vm427_vm14, %v422_v56 }
0x11f7   :  { %v672_v58 = vpop.permute.xlu2 %671 }
0x11f8   :  { %v549_v59 = vpop.permute.xlu1 %548  ;;  %678 = vst.msk [vmem:[#allocation9] sm:$0x10] %vm677_vm12, %v672_v58 }
0x11f9   :  { %554 = vst.msk [vmem:[#allocation9 + $0x8] sm:$0x8] %vm552_vm11, %v549_v59 }
0x11ff   :  { %v799_v61 = vpop.permute.xlu2 %798 }
0x1200   :  { %v797_v62 = vpop.permute.xlu1 %796  ;;  %804 = vst.msk [vmem:[#allocation9 + $0x8] sm:$0x20] %vm802_vm15, %v799_v61 }
0x1201   :  { %803 = vst.msk [vmem:[#allocation9] sm:$0x20] %vm802_vm15, %v797_v62 }
0x1208   :  { %v924_v63 = vpop.permute.xlu1 %923 }
0x1209   :  { %929 = vst.msk [vmem:[#allocation9 + $0x8] sm:$0x40] %vm927_vm13, %v924_v63 }
0x123c   :  { %v1047_v0 = vpop.permute.xlu2 %1046 }
0x123d   :  { %1053 = vst.msk [vmem:[#allocation9] sm:$0x80] %vm1052_vm0, %v1047_v0 }
0x123e   :  { %1059 = vst.msk [vmem:[#allocation2 - $0x7] sm:$0x80] %vm1052_vm0, %v1047_v0 }
0x1244   :  { %v1065_v1 = vpop.permute.xlu2 %1064 }
0x1245   :  { %1070 = vst.msk [vmem:[#allocation3 - $0x7] sm:$0x80] %vm1052_vm0, %v1065_v1 }
0x1255   :  { %v1049_v2 = vpop.permute.xlu0 %1048 }
0x1256   :  { %1054 = vst.msk [vmem:[#allocation9 + $0x8] sm:$0x80] %vm1052_vm0, %v1049_v2 }
0x1257   :  { %v1057_v3 = vpop.permute.xlu1 %1056  ;;  %1084 = dma.vmem_to_hbm [thread:$0]  %s1077_s23, 256, %s1079_s26, [#allocation6], %s1334_s17, %s1334_s17, %s1335_s18  }
0x1258   :  { %1060 = vst.msk [vmem:[#allocation2 + $0x1] sm:$0x1] %vm179_vm8, %v1057_v3 }
0x125d   :  { %v1067_v4 = vpop.permute.xlu0 %1066 }
0x125e   :  { %1071 = vst.msk [vmem:[#allocation3 + $0x1] sm:$0x1] %vm179_vm8, %v1067_v4 }
0x125f   :  { %1331 = dma.done.wait [#allocation6], 256  }
0x1260   :  { %1332 = vsyncadd [#allocation6], 4294967040 }
0x1261   :  { %1089 = vsyncpa [#allocation5], 1 }
0x1262   :  { %1090 = vsyncpa [#allocation8], 1 }
0x1263   :  { %1091 = vsyncpa [#allocation6], 1 }

</bundles_post_ra>
